<compile_context>
chip_gen: v5e
topology: v5e:2x2
jax: 0.10.0
libtpu: 0.0.40
codegen_flags: <defaults>
</compile_context>

<pallas_src>
import functools

import jax
import jax.numpy as jnp
from jax.experimental import pallas as pl
from jax.experimental.pallas import tpu as pltpu

# ---------------- configuration (stands in for argparse `args`) ----------------
H1 = 128
H2 = 64
Z_DIM = 32
ADD_BN = True
BN_EPS = 1e-5
BATCH = 8
IN_DIM = 784          # 28 * 28
IN_PAD = 896          # 7 * 128, lane-dense padding of the feature dim
MAX_FUSED_B = 256     # whole batch fused into one kernel if padded B <= this


def _round_up(x, m):
    return (x + m - 1) // m * m


# ---------------- fused kernel: whole forward, whole batch in one block --------
def fused_vae_kernel(x_ref, w1_ref, b1_ref, w2_ref, b2_ref, wh_ref, bh_ref,
                     g_ref, be_ref, eps_ref,
                     wd1_ref, bd1_ref, wd2_ref, bd2_ref, wd3_ref, bd3_ref,
                     pred_ref, mulv_ref, *, z_dim, b_valid, add_bn):
    # ---- encoder ----
    x = x_ref[...]                                            # (B_pad, IN_PAD) bf16
    h = jnp.dot(x, w1_ref[...], preferred_element_type=jnp.float32) + b1_ref[...]
    h = jnp.maximum(h, 0.0)
    h = jnp.dot(h.astype(jnp.bfloat16), w2_ref[...],
                preferred_element_type=jnp.float32) + b2_ref[...]
    h = jnp.maximum(h, 0.0)
    # Fused [mu | log_var] head: single (H2, 2*Z) matmul, packed 64-lane output.
    mulv = (jnp.dot(h.astype(jnp.bfloat16), wh_ref[...],
                    preferred_element_type=jnp.float32) + bh_ref[...])
    mu = mulv[:, :z_dim]
    log_var = mulv[:, z_dim:]

    # ---- BatchNorm1d(mu), training mode: biased whole-batch statistics ----
    if add_bn:
        rows = jax.lax.broadcasted_iota(jnp.int32, (mu.shape[0], 1), 0)
        mask = (rows < b_valid).astype(jnp.float32)           # ignore padded rows
        inv_n = 1.0 / float(b_valid)
        mean = jnp.sum(mu * mask, axis=0, keepdims=True) * inv_n
        cen = (mu - mean) * mask
        var = jnp.sum(cen * cen, axis=0, keepdims=True) * inv_n
        inv_std = jax.lax.rsqrt(var + BN_EPS)
        mu = (mu - mean) * inv_std * g_ref[...] + be_ref[...]

    # ---- reparameterization (f32 elementwise; eps pre-sampled on host) ----
    z = mu + jnp.exp(0.5 * log_var) * eps_ref[...]

    # ---- decoder ----
    d = jnp.dot(z.astype(jnp.bfloat16), wd1_ref[...],
                preferred_element_type=jnp.float32) + bd1_ref[...]
    d = jnp.maximum(d, 0.0)
    d = jnp.dot(d.astype(jnp.bfloat16), wd2_ref[...],
                preferred_element_type=jnp.float32) + bd2_ref[...]
    d = jnp.maximum(d, 0.0)
    logits = jnp.dot(d.astype(jnp.bfloat16), wd3_ref[...],
                     preferred_element_type=jnp.float32) + bd3_ref[...]
    pred_ref[...] = jax.nn.sigmoid(logits)
    mulv_ref[...] = jnp.concatenate([mu, log_var], axis=-1)


# ---------------- two-pass path for large batches -------------------------------
def encoder_kernel(x_ref, w1_ref, b1_ref, w2_ref, b2_ref, wh_ref, bh_ref,
                   mulv_ref):
    x = x_ref[...]
    h = jnp.dot(x, w1_ref[...], preferred_element_type=jnp.float32) + b1_ref[...]
    h = jnp.maximum(h, 0.0)
    h = jnp.dot(h.astype(jnp.bfloat16), w2_ref[...],
                preferred_element_type=jnp.float32) + b2_ref[...]
    h = jnp.maximum(h, 0.0)
    mulv_ref[...] = (jnp.dot(h.astype(jnp.bfloat16), wh_ref[...],
                             preferred_element_type=jnp.float32) + bh_ref[...])


def decoder_kernel(mulv_ref, g_ref, be_ref, eps_ref,
                   wd1_ref, bd1_ref, wd2_ref, bd2_ref, wd3_ref, bd3_ref,
                   pred_ref, mulv_out_ref,
                   *, z_dim, tile_b, b_valid, add_bn):
    j = pl.program_id(0)

    if add_bn:
        # Whole-batch stats of mu from the fully VMEM-resident packed tensor.
        mulv_all = mulv_ref[...]                               # (B_pad, 2*Z) f32
        mu_all = mulv_all[:, :z_dim]
        rows = jax.lax.broadcasted_iota(jnp.int32, (mu_all.shape[0], 1), 0)
        mask = (rows < b_valid).astype(jnp.float32)
        inv_n = 1.0 / float(b_valid)
        mean = jnp.sum(mu_all * mask, axis=0, keepdims=True) * inv_n
        cen = (mu_all - mean) * mask
        var = jnp.sum(cen * cen, axis=0, keepdims=True) * inv_n
        inv_std = jax.lax.rsqrt(var + BN_EPS)

    start = pl.multiple_of(j * tile_b, tile_b)
    tile = mulv_ref[pl.ds(start, tile_b), :]                   # (TILE_B, 2*Z) f32
    mu = tile[:, :z_dim]
    log_var = tile[:, z_dim:]

    if add_bn:
        mu = (mu - mean) * inv_std * g_ref[...] + be_ref[...]

    z = mu + jnp.exp(0.5 * log_var) * eps_ref[...]

    d = jnp.dot(z.astype(jnp.bfloat16), wd1_ref[...],
                preferred_element_type=jnp.float32) + bd1_ref[...]
    d = jnp.maximum(d, 0.0)
    d = jnp.dot(d.astype(jnp.bfloat16), wd2_ref[...],
                preferred_element_type=jnp.float32) + bd2_ref[...]
    d = jnp.maximum(d, 0.0)
    logits = jnp.dot(d.astype(jnp.bfloat16), wd3_ref[...],
                     preferred_element_type=jnp.float32) + bd3_ref[...]
    pred_ref[...] = jax.nn.sigmoid(logits)
    mulv_out_ref[...] = jnp.concatenate([mu, log_var], axis=-1)


# ----------------------------------- wrapper ------------------------------------
def vae_forward(x, kp, eps):
    """x: (B, 1, 28, 28) or (B, 784); kp: prepared params; eps: (B, Z_DIM)."""
    b = x.shape[0]
    x2d = x.reshape(b, IN_DIM).astype(jnp.float32)             # == x.view(-1, 784)

    if _round_up(b, 8) <= MAX_FUSED_B:
        # -------- single fused kernel: whole batch in one VMEM block --------
        b_pad = _round_up(b, 8)
        x_pad = jnp.zeros((b_pad, IN_PAD), jnp.bfloat16).at[:b, :IN_DIM].set(
            x2d.astype(jnp.bfloat16))
        eps_pad = jnp.zeros((b_pad, Z_DIM), jnp.float32).at[:b].set(
            eps.astype(jnp.float32))

        full = lambda i: (0, 0)
        kern = functools.partial(fused_vae_kernel, z_dim=Z_DIM, b_valid=b,
                                 add_bn=ADD_BN)
        pred_pad, mulv_out = pl.pallas_call(
            kern,
            out_shape=(jax.ShapeDtypeStruct((b_pad, IN_PAD), jnp.float32),
                       jax.ShapeDtypeStruct((b_pad, 2 * Z_DIM), jnp.float32)),
            grid=(1,),
            in_specs=[
                pl.BlockSpec((b_pad, IN_PAD), full),          # x (bf16)
                pl.BlockSpec((IN_PAD, H1), full),             # w1 (bf16)
                pl.BlockSpec((1, H1), full),                  # b1 (f32)
                pl.BlockSpec((H1, H2), full),                 # w2 (bf16)
                pl.BlockSpec((1, H2), full),                  # b2 (f32)
                pl.BlockSpec((H2, 2 * Z_DIM), full),          # fused head weight
                pl.BlockSpec((1, 2 * Z_DIM), full),           # fused head bias
                pl.BlockSpec((1, Z_DIM), full),               # BN gamma
                pl.BlockSpec((1, Z_DIM), full),               # BN beta
                pl.BlockSpec((b_pad, Z_DIM), full),           # eps
                pl.BlockSpec((Z_DIM, H2), full),              # wd1 (bf16)
                pl.BlockSpec((1, H2), full),
                pl.BlockSpec((H2, H1), full),                 # wd2 (bf16)
                pl.BlockSpec((1, H1), full),
                pl.BlockSpec((H1, IN_PAD), full),             # wd3 (bf16, padded)
                pl.BlockSpec((1, IN_PAD), full),
            ],
            out_specs=(pl.BlockSpec((b_pad, IN_PAD), full),
                       pl.BlockSpec((b_pad, 2 * Z_DIM), full)),
            compiler_params=pltpu.CompilerParams(
                dimension_semantics=("arbitrary",)),
        )(x_pad, kp["w1"], kp["b1"], kp["w2"], kp["b2"], kp["wh"], kp["bh"],
          kp["bn_gamma"], kp["bn_beta"], eps_pad,
          kp["wd1"], kp["bd1"], kp["wd2"], kp["bd2"], kp["wd3"], kp["bd3"])

        pred = pred_pad[:b, :IN_DIM]
        return pred, mulv_out[:b, :Z_DIM], mulv_out[:b, Z_DIM:]

    # ------------- large batch: two-pass, batch-tiled, weights resident ----------
    tile_b = min(128, _round_up(b, 8))
    b_pad = _round_up(b, tile_b)
    n_tiles = b_pad // tile_b

    x_pad = jnp.zeros((b_pad, IN_PAD), jnp.bfloat16).at[:b, :IN_DIM].set(
        x2d.astype(jnp.bfloat16))
    eps_pad = jnp.zeros((b_pad, Z_DIM), jnp.float32).at[:b].set(
        eps.astype(jnp.float32))

    resident = lambda j: (0, 0)   # weights / small tensors stay in VMEM
    btile = lambda j: (j, 0)      # batch-tiled tensors

    mulv = pl.pallas_call(
        encoder_kernel,
        out_shape=jax.ShapeDtypeStruct((b_pad, 2 * Z_DIM), jnp.float32),
        grid=(n_tiles,),
        in_specs=[
            pl.BlockSpec((tile_b, IN_PAD), btile),
            pl.BlockSpec((IN_PAD, H1), resident),
            pl.BlockSpec((1, H1), resident),
            pl.BlockSpec((H1, H2), resident),
            pl.BlockSpec((1, H2), resident),
            pl.BlockSpec((H2, 2 * Z_DIM), resident),
            pl.BlockSpec((1, 2 * Z_DIM), resident),
        ],
        out_specs=pl.BlockSpec((tile_b, 2 * Z_DIM), btile),
        compiler_params=pltpu.CompilerParams(
            dimension_semantics=("parallel",)),
    )(x_pad, kp["w1"], kp["b1"], kp["w2"], kp["b2"], kp["wh"], kp["bh"])

    kern_b = functools.partial(decoder_kernel, z_dim=Z_DIM, tile_b=tile_b,
                               b_valid=b, add_bn=ADD_BN)
    pred_pad, mulv_out = pl.pallas_call(
        kern_b,
        out_shape=(jax.ShapeDtypeStruct((b_pad, IN_PAD), jnp.float32),
                   jax.ShapeDtypeStruct((b_pad, 2 * Z_DIM), jnp.float32)),
        grid=(n_tiles,),
        in_specs=[
            pl.BlockSpec((b_pad, 2 * Z_DIM), resident),   # full [mu|logvar]
            pl.BlockSpec((1, Z_DIM), resident),
            pl.BlockSpec((1, Z_DIM), resident),
            pl.BlockSpec((tile_b, Z_DIM), btile),
            pl.BlockSpec((Z_DIM, H2), resident),
            pl.BlockSpec((1, H2), resident),
            pl.BlockSpec((H2, H1), resident),
            pl.BlockSpec((1, H1), resident),
            pl.BlockSpec((H1, IN_PAD), resident),
            pl.BlockSpec((1, IN_PAD), resident),
        ],
        out_specs=(pl.BlockSpec((tile_b, IN_PAD), btile),
                   pl.BlockSpec((tile_b, 2 * Z_DIM), btile)),
        compiler_params=pltpu.CompilerParams(
            dimension_semantics=("parallel",)),
    )(mulv, kp["bn_gamma"], kp["bn_beta"], eps_pad,
      kp["wd1"], kp["bd1"], kp["wd2"], kp["bd2"], kp["wd3"], kp["bd3"])

    pred = pred_pad[:b, :IN_DIM]
    return pred, mulv_out[:b, :Z_DIM], mulv_out[:b, Z_DIM:]


# --------------------------- deterministic params --------------------------------
def init_params(key):
    """Deterministic init. Linear weights stored as (in, out) = PyTorch W.T."""
    def linear(k, fan_in, fan_out):
        kw, kb = jax.random.split(k)
        bound = 1.0 / jnp.sqrt(fan_in)
        w = jax.random.uniform(kw, (fan_in, fan_out), jnp.float32, -bound, bound)
        b = jax.random.uniform(kb, (1, fan_out), jnp.float32, -bound, bound)
        return w, b

    keys = jax.random.split(key, 7)
    p = {}
    p["w1"], p["b1"] = linear(keys[0], IN_DIM, H1)
    p["w2"], p["b2"] = linear(keys[1], H1, H2)
    p["wmu"], p["bmu"] = linear(keys[2], H2, Z_DIM)
    p["wvar"], p["bvar"] = linear(keys[3], H2, Z_DIM)
    p["wd1"], p["bd1"] = linear(keys[4], Z_DIM, H2)
    p["wd2"], p["bd2"] = linear(keys[5], H2, H1)
    p["wd3"], p["bd3"] = linear(keys[6], H1, IN_DIM)
    # BatchNorm1d: weight=1 (requires_grad=False in the PyTorch module), bias=0.
    p["bn_gamma"] = jnp.ones((1, Z_DIM), jnp.float32)
    p["bn_beta"] = jnp.zeros((1, Z_DIM), jnp.float32)
    return p


def prepare_params(p):
    """Pad to lane-dense widths, fuse the two latent heads, cast weights to bf16."""
    kp = {}
    w1 = jnp.zeros((IN_PAD, H1), jnp.float32).at[:IN_DIM].set(p["w1"])
    kp["w1"] = w1.astype(jnp.bfloat16)
    kp["b1"] = p["b1"]
    kp["w2"] = p["w2"].astype(jnp.bfloat16)
    kp["b2"] = p["b2"]
    kp["wh"] = jnp.concatenate([p["wmu"], p["wvar"]], axis=1).astype(jnp.bfloat16)
    kp["bh"] = jnp.concatenate([p["bmu"], p["bvar"]], axis=1)
    kp["wd1"] = p["wd1"].astype(jnp.bfloat16)
    kp["bd1"] = p["bd1"]
    kp["wd2"] = p["wd2"].astype(jnp.bfloat16)
    kp["bd2"] = p["bd2"]
    wd3 = jnp.zeros((H1, IN_PAD), jnp.float32).at[:, :IN_DIM].set(p["wd3"])
    kp["wd3"] = wd3.astype(jnp.bfloat16)
    kp["bd3"] = jnp.zeros((1, IN_PAD), jnp.float32).at[:, :IN_DIM].set(p["bd3"])
    kp["bn_gamma"] = p["bn_gamma"]
    kp["bn_beta"] = p["bn_beta"]
    return kp


# ----------------------- pure-JAX reference (same numerics) ----------------------
def vae_reference(x, kp, eps):
    """Mirrors the kernel math (bf16 weights/activations, f32 accumulation)."""
    b = x.shape[0]
    f32 = lambda a: a.astype(jnp.float32)
    bf = lambda a: a.astype(jnp.bfloat16).astype(jnp.float32)
    x2d = bf(x.reshape(b, IN_DIM).astype(jnp.float32))
    h = jnp.maximum(x2d @ f32(kp["w1"][:IN_DIM]) + kp["b1"], 0.0)
    h = jnp.maximum(bf(h) @ f32(kp["w2"]) + kp["b2"], 0.0)
    mulv = bf(h) @ f32(kp["wh"]) + kp["bh"]
    mu, log_var = mulv[:, :Z_DIM], mulv[:, Z_DIM:]
    if ADD_BN:
        mean = jnp.mean(mu, axis=0, keepdims=True)
        var = jnp.mean((mu - mean) ** 2, axis=0, keepdims=True)
        mu = (mu - mean) * jax.lax.rsqrt(var + BN_EPS) * kp["bn_gamma"] + kp["bn_beta"]
    z = mu + jnp.exp(0.5 * log_var) * eps
    d = jnp.maximum(bf(z) @ f32(kp["wd1"]) + kp["bd1"], 0.0)
    d = jnp.maximum(bf(d) @ f32(kp["wd2"]) + kp["bd2"], 0.0)
    logits = bf(d) @ f32(kp["wd3"][:, :IN_DIM]) + kp["bd3"][:, :IN_DIM]
    return jax.nn.sigmoid(logits), mu, log_var


if __name__ == "__main__":
    root = jax.random.PRNGKey(0)
    k_x, k_p, k_eps = jax.random.split(root, 3)

    x = jax.random.uniform(k_x, (BATCH, 1, 28, 28), jnp.float32)   # MNIST-like input
    params = init_params(k_p)
    kparams = prepare_params(params)
    # torch.randn_like(std): standard-normal noise, pre-sampled deterministically.
    eps = jax.random.normal(k_eps, (BATCH, Z_DIM), jnp.float32)

    pred, mu, log_var = jax.jit(vae_forward)(x, kparams, eps)
    jax.block_until_ready((pred, mu, log_var))

    assert pred.shape == (BATCH, IN_DIM)
    assert mu.shape == (BATCH, Z_DIM)
    assert log_var.shape == (BATCH, Z_DIM)

    pred_r, mu_r, lv_r = vae_reference(x, kparams, eps)
    assert float(jnp.max(jnp.abs(pred - pred_r))) < 5e-3
    assert float(jnp.max(jnp.abs(mu - mu_r))) < 5e-3
    assert float(jnp.max(jnp.abs(log_var - lv_r))) < 5e-3
    print("KERNEL_OK")
</pallas_src>

<mosaic_0001>
module attributes {stable_mosaic.version = 11 : i64} {
  func.func @fused_vae_kernel(%arg0: i32, %arg1: memref<8x896xbf16, #tpu.memory_space<vmem>>, %arg2: memref<896x128xbf16, #tpu.memory_space<vmem>>, %arg3: memref<1x128xf32, #tpu.memory_space<vmem>>, %arg4: memref<128x64xbf16, #tpu.memory_space<vmem>>, %arg5: memref<1x64xf32, #tpu.memory_space<vmem>>, %arg6: memref<64x64xbf16, #tpu.memory_space<vmem>>, %arg7: memref<1x64xf32, #tpu.memory_space<vmem>>, %arg8: memref<1x32xf32, #tpu.memory_space<vmem>>, %arg9: memref<1x32xf32, #tpu.memory_space<vmem>>, %arg10: memref<8x32xf32, #tpu.memory_space<vmem>>, %arg11: memref<32x64xbf16, #tpu.memory_space<vmem>>, %arg12: memref<1x64xf32, #tpu.memory_space<vmem>>, %arg13: memref<64x128xbf16, #tpu.memory_space<vmem>>, %arg14: memref<1x128xf32, #tpu.memory_space<vmem>>, %arg15: memref<128x896xbf16, #tpu.memory_space<vmem>>, %arg16: memref<1x896xf32, #tpu.memory_space<vmem>>, %arg17: memref<8x896xf32, #tpu.memory_space<vmem>>, %arg18: memref<8x64xf32, #tpu.memory_space<vmem>>) attributes {dimension_semantics = [#tpu.dimension_semantics<arbitrary>], iteration_bounds = array<i64: 1>, scalar_prefetch = 0 : i64, scratch_operands = 0 : i64, tpu.core_type = #tpu.core_type<tc>, window_params = [{pipeline_mode = #tpu.pipeline_mode<synchronous>, transform_indices = @transform_0, window_bounds = array<i64: 8, 896>}, {pipeline_mode = #tpu.pipeline_mode<synchronous>, transform_indices = @transform_1, window_bounds = array<i64: 896, 128>}, {pipeline_mode = #tpu.pipeline_mode<synchronous>, transform_indices = @transform_2, window_bounds = array<i64: 1, 128>}, {pipeline_mode = #tpu.pipeline_mode<synchronous>, transform_indices = @transform_3, window_bounds = array<i64: 128, 64>}, {pipeline_mode = #tpu.pipeline_mode<synchronous>, transform_indices = @transform_4, window_bounds = array<i64: 1, 64>}, {pipeline_mode = #tpu.pipeline_mode<synchronous>, transform_indices = @transform_5, window_bounds = array<i64: 64, 64>}, {pipeline_mode = #tpu.pipeline_mode<synchronous>, transform_indices = @transform_6, window_bounds = array<i64: 1, 64>}, {pipeline_mode = #tpu.pipeline_mode<synchronous>, transform_indices = @transform_7, window_bounds = array<i64: 1, 32>}, {pipeline_mode = #tpu.pipeline_mode<synchronous>, transform_indices = @transform_8, window_bounds = array<i64: 1, 32>}, {pipeline_mode = #tpu.pipeline_mode<synchronous>, transform_indices = @transform_9, window_bounds = array<i64: 8, 32>}, {pipeline_mode = #tpu.pipeline_mode<synchronous>, transform_indices = @transform_10, window_bounds = array<i64: 32, 64>}, {pipeline_mode = #tpu.pipeline_mode<synchronous>, transform_indices = @transform_11, window_bounds = array<i64: 1, 64>}, {pipeline_mode = #tpu.pipeline_mode<synchronous>, transform_indices = @transform_12, window_bounds = array<i64: 64, 128>}, {pipeline_mode = #tpu.pipeline_mode<synchronous>, transform_indices = @transform_13, window_bounds = array<i64: 1, 128>}, {pipeline_mode = #tpu.pipeline_mode<synchronous>, transform_indices = @transform_14, window_bounds = array<i64: 128, 896>}, {pipeline_mode = #tpu.pipeline_mode<synchronous>, transform_indices = @transform_15, window_bounds = array<i64: 1, 896>}, {pipeline_mode = #tpu.pipeline_mode<synchronous>, transform_indices = @transform_16, window_bounds = array<i64: 8, 896>}, {pipeline_mode = #tpu.pipeline_mode<synchronous>, transform_indices = @transform_17, window_bounds = array<i64: 8, 64>}]} {
    %c0 = arith.constant 0 : index
    %c0_0 = arith.constant 0 : index
    %0 = vector.load %arg1[%c0, %c0_0] : memref<8x896xbf16, #tpu.memory_space<vmem>>, vector<8x896xbf16>
    %c0_1 = arith.constant 0 : index
    %c0_2 = arith.constant 0 : index
    %1 = vector.load %arg2[%c0_1, %c0_2] : memref<896x128xbf16, #tpu.memory_space<vmem>>, vector<896x128xbf16>
    %cst = arith.constant dense<0.000000e+00> : vector<8x128xf32>
    %2 = tpu.matmul %0, %1, %cst {dimension_numbers = #tpu.dot_dimension_numbers<[1], [0], [0], [1], [0, 0, 1, 1], [], []>} : vector<8x896xbf16>, vector<896x128xbf16>, vector<8x128xf32> -> vector<8x128xf32>
    %c0_3 = arith.constant 0 : index
    %c0_4 = arith.constant 0 : index
    %3 = vector.load %arg3[%c0_3, %c0_4] : memref<1x128xf32, #tpu.memory_space<vmem>>, vector<1x128xf32>
    %4 = vector.broadcast %3 : vector<1x128xf32> to vector<8x128xf32>
    %5 = arith.addf %2, %4 : vector<8x128xf32>
    %cst_5 = arith.constant 0.000000e+00 : f32
    %6 = vector.broadcast %cst_5 : f32 to vector<8x128xf32>
    %7 = arith.maximumf %5, %6 : vector<8x128xf32>
    %8 = arith.truncf %7 : vector<8x128xf32> to vector<8x128xbf16>
    %c0_6 = arith.constant 0 : index
    %c0_7 = arith.constant 0 : index
    %9 = vector.load %arg4[%c0_6, %c0_7] : memref<128x64xbf16, #tpu.memory_space<vmem>>, vector<128x64xbf16>
    %cst_8 = arith.constant dense<0.000000e+00> : vector<8x64xf32>
    %10 = tpu.matmul %8, %9, %cst_8 {dimension_numbers = #tpu.dot_dimension_numbers<[1], [0], [0], [1], [0, 0, 1, 1], [], []>} : vector<8x128xbf16>, vector<128x64xbf16>, vector<8x64xf32> -> vector<8x64xf32>
    %c0_9 = arith.constant 0 : index
    %c0_10 = arith.constant 0 : index
    %11 = vector.load %arg5[%c0_9, %c0_10] : memref<1x64xf32, #tpu.memory_space<vmem>>, vector<1x64xf32>
    %12 = vector.broadcast %11 : vector<1x64xf32> to vector<8x64xf32>
    %13 = arith.addf %10, %12 : vector<8x64xf32>
    %cst_11 = arith.constant 0.000000e+00 : f32
    %14 = vector.broadcast %cst_11 : f32 to vector<8x64xf32>
    %15 = arith.maximumf %13, %14 : vector<8x64xf32>
    %16 = arith.truncf %15 : vector<8x64xf32> to vector<8x64xbf16>
    %c0_12 = arith.constant 0 : index
    %c0_13 = arith.constant 0 : index
    %17 = vector.load %arg6[%c0_12, %c0_13] : memref<64x64xbf16, #tpu.memory_space<vmem>>, vector<64x64xbf16>
    %cst_14 = arith.constant dense<0.000000e+00> : vector<8x64xf32>
    %18 = tpu.matmul %16, %17, %cst_14 {dimension_numbers = #tpu.dot_dimension_numbers<[1], [0], [0], [1], [0, 0, 1, 1], [], []>} : vector<8x64xbf16>, vector<64x64xbf16>, vector<8x64xf32> -> vector<8x64xf32>
    %c0_15 = arith.constant 0 : index
    %c0_16 = arith.constant 0 : index
    %19 = vector.load %arg7[%c0_15, %c0_16] : memref<1x64xf32, #tpu.memory_space<vmem>>, vector<1x64xf32>
    %20 = vector.broadcast %19 : vector<1x64xf32> to vector<8x64xf32>
    %21 = arith.addf %18, %20 : vector<8x64xf32>
    %22 = vector.extract_strided_slice %21 {offsets = [0, 0], sizes = [8, 32], strides = [1, 1]} : vector<8x64xf32> to vector<8x32xf32>
    %23 = vector.extract_strided_slice %21 {offsets = [0, 32], sizes = [8, 32], strides = [1, 1]} : vector<8x64xf32> to vector<8x32xf32>
    %24 = tpu.iota {dimensions = array<i32: 0>} : vector<8x1xi32>
    %c8_i32 = arith.constant 8 : i32
    %25 = vector.broadcast %c8_i32 : i32 to vector<8x1xi32>
    %26 = arith.cmpi slt, %24, %25 : vector<8x1xi32>
    %27 = arith.extui %26 : vector<8x1xi1> to vector<8x1xi32>
    %28 = arith.sitofp %27 : vector<8x1xi32> to vector<8x1xf32>
    %29 = vector.broadcast %28 : vector<8x1xf32> to vector<8x32xf32>
    %30 = arith.mulf %22, %29 : vector<8x32xf32>
    %cst_17 = arith.constant dense<0.000000e+00> : vector<32xf32>
    %31 = vector.multi_reduction <add>, %30, %cst_17 [0] : vector<8x32xf32> to vector<32xf32>
    %32 = vector.shape_cast %31 : vector<32xf32> to vector<1x32xf32>
    %cst_18 = arith.constant 1.250000e-01 : f32
    %33 = vector.broadcast %cst_18 : f32 to vector<1x32xf32>
    %34 = arith.mulf %32, %33 : vector<1x32xf32>
    %35 = vector.broadcast %34 : vector<1x32xf32> to vector<8x32xf32>
    %36 = arith.subf %22, %35 : vector<8x32xf32>
    %37 = vector.broadcast %28 : vector<8x1xf32> to vector<8x32xf32>
    %38 = arith.mulf %36, %37 : vector<8x32xf32>
    %39 = arith.mulf %38, %38 : vector<8x32xf32>
    %cst_19 = arith.constant dense<0.000000e+00> : vector<32xf32>
    %40 = vector.multi_reduction <add>, %39, %cst_19 [0] : vector<8x32xf32> to vector<32xf32>
    %41 = vector.shape_cast %40 : vector<32xf32> to vector<1x32xf32>
    %cst_20 = arith.constant 1.250000e-01 : f32
    %42 = vector.broadcast %cst_20 : f32 to vector<1x32xf32>
    %43 = arith.mulf %41, %42 : vector<1x32xf32>
    %cst_21 = arith.constant 9.99999974E-6 : f32
    %44 = vector.broadcast %cst_21 : f32 to vector<1x32xf32>
    %45 = arith.addf %43, %44 : vector<1x32xf32>
    %46 = math.rsqrt %45 : vector<1x32xf32>
    %47 = vector.broadcast %34 : vector<1x32xf32> to vector<8x32xf32>
    %48 = arith.subf %22, %47 : vector<8x32xf32>
    %49 = vector.broadcast %46 : vector<1x32xf32> to vector<8x32xf32>
    %50 = arith.mulf %48, %49 : vector<8x32xf32>
    %c0_22 = arith.constant 0 : index
    %c0_23 = arith.constant 0 : index
    %51 = vector.load %arg8[%c0_22, %c0_23] : memref<1x32xf32, #tpu.memory_space<vmem>>, vector<1x32xf32>
    %52 = vector.broadcast %51 : vector<1x32xf32> to vector<8x32xf32>
    %53 = arith.mulf %50, %52 : vector<8x32xf32>
    %c0_24 = arith.constant 0 : index
    %c0_25 = arith.constant 0 : index
    %54 = vector.load %arg9[%c0_24, %c0_25] : memref<1x32xf32, #tpu.memory_space<vmem>>, vector<1x32xf32>
    %55 = vector.broadcast %54 : vector<1x32xf32> to vector<8x32xf32>
    %56 = arith.addf %53, %55 : vector<8x32xf32>
    %cst_26 = arith.constant 5.000000e-01 : f32
    %57 = vector.broadcast %cst_26 : f32 to vector<8x32xf32>
    %58 = arith.mulf %57, %23 : vector<8x32xf32>
    %59 = math.exp %58 : vector<8x32xf32>
    %c0_27 = arith.constant 0 : index
    %c0_28 = arith.constant 0 : index
    %60 = vector.load %arg10[%c0_27, %c0_28] : memref<8x32xf32, #tpu.memory_space<vmem>>, vector<8x32xf32>
    %61 = arith.mulf %59, %60 : vector<8x32xf32>
    %62 = arith.addf %56, %61 : vector<8x32xf32>
    %63 = arith.truncf %62 : vector<8x32xf32> to vector<8x32xbf16>
    %c0_29 = arith.constant 0 : index
    %c0_30 = arith.constant 0 : index
    %64 = vector.load %arg11[%c0_29, %c0_30] : memref<32x64xbf16, #tpu.memory_space<vmem>>, vector<32x64xbf16>
    %cst_31 = arith.constant dense<0.000000e+00> : vector<8x64xf32>
    %65 = tpu.matmul %63, %64, %cst_31 {dimension_numbers = #tpu.dot_dimension_numbers<[1], [0], [0], [1], [0, 0, 1, 1], [], []>} : vector<8x32xbf16>, vector<32x64xbf16>, vector<8x64xf32> -> vector<8x64xf32>
    %c0_32 = arith.constant 0 : index
    %c0_33 = arith.constant 0 : index
    %66 = vector.load %arg12[%c0_32, %c0_33] : memref<1x64xf32, #tpu.memory_space<vmem>>, vector<1x64xf32>
    %67 = vector.broadcast %66 : vector<1x64xf32> to vector<8x64xf32>
    %68 = arith.addf %65, %67 : vector<8x64xf32>
    %cst_34 = arith.constant 0.000000e+00 : f32
    %69 = vector.broadcast %cst_34 : f32 to vector<8x64xf32>
    %70 = arith.maximumf %68, %69 : vector<8x64xf32>
    %71 = arith.truncf %70 : vector<8x64xf32> to vector<8x64xbf16>
    %c0_35 = arith.constant 0 : index
    %c0_36 = arith.constant 0 : index
    %72 = vector.load %arg13[%c0_35, %c0_36] : memref<64x128xbf16, #tpu.memory_space<vmem>>, vector<64x128xbf16>
    %cst_37 = arith.constant dense<0.000000e+00> : vector<8x128xf32>
    %73 = tpu.matmul %71, %72, %cst_37 {dimension_numbers = #tpu.dot_dimension_numbers<[1], [0], [0], [1], [0, 0, 1, 1], [], []>} : vector<8x64xbf16>, vector<64x128xbf16>, vector<8x128xf32> -> vector<8x128xf32>
    %c0_38 = arith.constant 0 : index
    %c0_39 = arith.constant 0 : index
    %74 = vector.load %arg14[%c0_38, %c0_39] : memref<1x128xf32, #tpu.memory_space<vmem>>, vector<1x128xf32>
    %75 = vector.broadcast %74 : vector<1x128xf32> to vector<8x128xf32>
    %76 = arith.addf %73, %75 : vector<8x128xf32>
    %cst_40 = arith.constant 0.000000e+00 : f32
    %77 = vector.broadcast %cst_40 : f32 to vector<8x128xf32>
    %78 = arith.maximumf %76, %77 : vector<8x128xf32>
    %79 = arith.truncf %78 : vector<8x128xf32> to vector<8x128xbf16>
    %c0_41 = arith.constant 0 : index
    %c0_42 = arith.constant 0 : index
    %80 = vector.load %arg15[%c0_41, %c0_42] : memref<128x896xbf16, #tpu.memory_space<vmem>>, vector<128x896xbf16>
    %cst_43 = arith.constant dense<0.000000e+00> : vector<8x896xf32>
    %81 = tpu.matmul %79, %80, %cst_43 {dimension_numbers = #tpu.dot_dimension_numbers<[1], [0], [0], [1], [0, 0, 1, 1], [], []>} : vector<8x128xbf16>, vector<128x896xbf16>, vector<8x896xf32> -> vector<8x896xf32>
    %c0_44 = arith.constant 0 : index
    %c0_45 = arith.constant 0 : index
    %82 = vector.load %arg16[%c0_44, %c0_45] : memref<1x896xf32, #tpu.memory_space<vmem>>, vector<1x896xf32>
    %83 = vector.broadcast %82 : vector<1x896xf32> to vector<8x896xf32>
    %84 = arith.addf %81, %83 : vector<8x896xf32>
    %85 = arith.negf %84 : vector<8x896xf32>
    %86 = math.exp %85 : vector<8x896xf32>
    %cst_46 = arith.constant 1.000000e+00 : f32
    %87 = vector.broadcast %cst_46 : f32 to vector<8x896xf32>
    %88 = arith.addf %87, %86 : vector<8x896xf32>
    %89 = arith.divf %87, %88 : vector<8x896xf32>
    %c0_47 = arith.constant 0 : index
    %c0_48 = arith.constant 0 : index
    %90 = vector.load %arg17[%c0_47, %c0_48] : memref<8x896xf32, #tpu.memory_space<vmem>>, vector<8x896xf32>
    tpu.vector_store %arg17[%c0_47, %c0_48], %89 {strides = array<i32>} : memref<8x896xf32, #tpu.memory_space<vmem>>, vector<8x896xf32>,
    %91 = tpu.concatenate %56, %23 in 1 : vector<8x32xf32>, vector<8x32xf32> -> vector<8x64xf32>
    %c0_49 = arith.constant 0 : index
    %c0_50 = arith.constant 0 : index
    %92 = vector.load %arg18[%c0_49, %c0_50] : memref<8x64xf32, #tpu.memory_space<vmem>>, vector<8x64xf32>
    tpu.vector_store %arg18[%c0_49, %c0_50], %91 {strides = array<i32>} : memref<8x64xf32, #tpu.memory_space<vmem>>, vector<8x64xf32>,
    return
  }
  func.func @transform_0(%arg0: i32) -> (i32, i32) {
    %c0_i32 = arith.constant 0 : i32
    %c0_i32_0 = arith.constant 0 : i32
    %c0_i32_1 = arith.constant 0 : i32
    return %c0_i32, %c0_i32_0 : i32, i32
  }
  func.func @transform_1(%arg0: i32) -> (i32, i32) {
    %c0_i32 = arith.constant 0 : i32
    %c0_i32_0 = arith.constant 0 : i32
    %c0_i32_1 = arith.constant 0 : i32
    return %c0_i32, %c0_i32_0 : i32, i32
  }
  func.func @transform_2(%arg0: i32) -> (i32, i32) {
    %c0_i32 = arith.constant 0 : i32
    %c0_i32_0 = arith.constant 0 : i32
    %c0_i32_1 = arith.constant 0 : i32
    return %c0_i32, %c0_i32_0 : i32, i32
  }
  func.func @transform_3(%arg0: i32) -> (i32, i32) {
    %c0_i32 = arith.constant 0 : i32
    %c0_i32_0 = arith.constant 0 : i32
    %c0_i32_1 = arith.constant 0 : i32
    return %c0_i32, %c0_i32_0 : i32, i32
  }
  func.func @transform_4(%arg0: i32) -> (i32, i32) {
    %c0_i32 = arith.constant 0 : i32
    %c0_i32_0 = arith.constant 0 : i32
    %c0_i32_1 = arith.constant 0 : i32
    return %c0_i32, %c0_i32_0 : i32, i32
  }
  func.func @transform_5(%arg0: i32) -> (i32, i32) {
    %c0_i32 = arith.constant 0 : i32
    %c0_i32_0 = arith.constant 0 : i32
    %c0_i32_1 = arith.constant 0 : i32
    return %c0_i32, %c0_i32_0 : i32, i32
  }
  func.func @transform_6(%arg0: i32) -> (i32, i32) {
    %c0_i32 = arith.constant 0 : i32
    %c0_i32_0 = arith.constant 0 : i32
    %c0_i32_1 = arith.constant 0 : i32
    return %c0_i32, %c0_i32_0 : i32, i32
  }
  func.func @transform_7(%arg0: i32) -> (i32, i32) {
    %c0_i32 = arith.constant 0 : i32
    %c0_i32_0 = arith.constant 0 : i32
    %c0_i32_1 = arith.constant 0 : i32
    return %c0_i32, %c0_i32_0 : i32, i32
  }
  func.func @transform_8(%arg0: i32) -> (i32, i32) {
    %c0_i32 = arith.constant 0 : i32
    %c0_i32_0 = arith.constant 0 : i32
    %c0_i32_1 = arith.constant 0 : i32
    return %c0_i32, %c0_i32_0 : i32, i32
  }
  func.func @transform_9(%arg0: i32) -> (i32, i32) {
    %c0_i32 = arith.constant 0 : i32
    %c0_i32_0 = arith.constant 0 : i32
    %c0_i32_1 = arith.constant 0 : i32
    return %c0_i32, %c0_i32_0 : i32, i32
  }
  func.func @transform_10(%arg0: i32) -> (i32, i32) {
    %c0_i32 = arith.constant 0 : i32
    %c0_i32_0 = arith.constant 0 : i32
    %c0_i32_1 = arith.constant 0 : i32
    return %c0_i32, %c0_i32_0 : i32, i32
  }
  func.func @transform_11(%arg0: i32) -> (i32, i32) {
    %c0_i32 = arith.constant 0 : i32
    %c0_i32_0 = arith.constant 0 : i32
    %c0_i32_1 = arith.constant 0 : i32
    return %c0_i32, %c0_i32_0 : i32, i32
  }
  func.func @transform_12(%arg0: i32) -> (i32, i32) {
    %c0_i32 = arith.constant 0 : i32
    %c0_i32_0 = arith.constant 0 : i32
    %c0_i32_1 = arith.constant 0 : i32
    return %c0_i32, %c0_i32_0 : i32, i32
  }
  func.func @transform_13(%arg0: i32) -> (i32, i32) {
    %c0_i32 = arith.constant 0 : i32
    %c0_i32_0 = arith.constant 0 : i32
    %c0_i32_1 = arith.constant 0 : i32
    return %c0_i32, %c0_i32_0 : i32, i32
  }
  func.func @transform_14(%arg0: i32) -> (i32, i32) {
    %c0_i32 = arith.constant 0 : i32
    %c0_i32_0 = arith.constant 0 : i32
    %c0_i32_1 = arith.constant 0 : i32
    return %c0_i32, %c0_i32_0 : i32, i32
  }
  func.func @transform_15(%arg0: i32) -> (i32, i32) {
    %c0_i32 = arith.constant 0 : i32
    %c0_i32_0 = arith.constant 0 : i32
    %c0_i32_1 = arith.constant 0 : i32
    return %c0_i32, %c0_i32_0 : i32, i32
  }
  func.func @transform_16(%arg0: i32) -> (i32, i32) {
    %c0_i32 = arith.constant 0 : i32
    %c0_i32_0 = arith.constant 0 : i32
    %c0_i32_1 = arith.constant 0 : i32
    return %c0_i32, %c0_i32_0 : i32, i32
  }
  func.func @transform_17(%arg0: i32) -> (i32, i32) {
    %c0_i32 = arith.constant 0 : i32
    %c0_i32_0 = arith.constant 0 : i32
    %c0_i32_1 = arith.constant 0 : i32
    return %c0_i32, %c0_i32_0 : i32, i32
  }
}

</mosaic_0001>

<bundles_post_ra>
// kernel: vae_forward.1
= control target key start
LH: loop header
LB: loop body
LE: loop exit
PB: predicated region body
PF: predicated region fallthrough
CT: control target
= control target key end

     0   :  { %s2719_s0 = inlined_call_operand.vmem [shape: bf16[8,896], index: 0, kind: input, shape index: {}]   ;;  %s2720_s1 = inlined_call_operand.vmem [shape: bf16[896,128], index: 1, kind: input, shape index: {}]   ;;  %s2721_s2 = inlined_call_operand.vmem [shape: f32[1,128], index: 2, kind: input, shape index: {}]   ;;  %s2722_s3 = inlined_call_operand.vmem [shape: bf16[128,64], index: 3, kind: input, shape index: {}]   ;;  %s2723_s4 = inlined_call_operand.vmem [shape: f32[1,64], index: 4, kind: input, shape index: {}]   ;;  %s2724_s5 = inlined_call_operand.vmem [shape: bf16[64,64], index: 5, kind: input, shape index: {}]   ;;  %s2725_s6 = inlined_call_operand.vmem [shape: f32[1,64], index: 6, kind: input, shape index: {}]   ;;  %s2726_s7 = inlined_call_operand.vmem [shape: f32[1,32], index: 7, kind: input, shape index: {}]   ;;  %s2727_s8 = inlined_call_operand.vmem [shape: f32[1,32], index: 8, kind: input, shape index: {}]   ;;  %s2728_s9 = inlined_call_operand.vmem [shape: f32[8,32], index: 9, kind: input, shape index: {}]   ;;  %s2729_s10 = inlined_call_operand.vmem [shape: bf16[32,64], index: 10, kind: input, shape index: {}]   ;;  %s2730_s11 = inlined_call_operand.vmem [shape: f32[1,64], index: 11, kind: input, shape index: {}]   ;;  %s2731_s12 = inlined_call_operand.vmem [shape: bf16[64,128], index: 12, kind: input, shape index: {}]   ;;  %s2732_s13 = inlined_call_operand.vmem [shape: f32[1,128], index: 13, kind: input, shape index: {}]   ;;  %s2733_s14 = inlined_call_operand.hbm [shape: bf16[128,896], index: 14, kind: input, shape index: {}]   ;;  %s2734_s15 = inlined_call_operand.vmem [shape: f32[1,896], index: 15, kind: input, shape index: {}]   ;;  %s2735_s16 = inlined_call_operand.hbm [shape: f32[8,896], index: 16, kind: output, shape index: {0}]   ;;  %s2736_s17 = inlined_call_operand.vmem [shape: f32[8,64], index: 17, kind: output, shape index: {1}]  }
   0x1   :  { %2739 = sst [smem:[#allocation8_spill]] %s2719_s0 }
   0x2   :  { %2740 = sst [smem:[#allocation9_spill]] %s2720_s1 }
   0x3   :  { %23 = vsyncpa [#allocation3], 0 }
   0x4   :  { %24 = vsyncpa [#allocation4], 0  ;;  %s57_s26 = sshll.u32 %s2733_s14, 4  ;;  %s2317_s27 = smov [#allocation2]   ;;  %s58_s26 = int_to_ptr.hbm [resolvable:$true] %s57_s26 }
   0x5   :  { %s59_s28 = sshll.u32 %s2317_s27, 4  ;;  %s2318_s29 = smov 448   ;;  %s60_s28 = int_to_ptr.vmem [resolvable:$true] %s59_s28 }
   0x6   :  { %s2319_s0 = smov 28  }
   0x7   :  { %65 = dma.hbm_to_vmem [thread:$0]  %s58_s26, 7168, %s60_s28, [#allocation3], %s2318_s29, %s2318_s29, %s2319_s0  }
   0x8   :  { %2313 = dma.done.wait [#allocation3], 7168  }
   0x9   :  { %2314 = vsyncadd [#allocation3], 4294960128  ;;  %s2741_s19 = sld [smem:[#allocation9_spill]]  ;;  %s2320_s0 = smov 32   ;;  %vm766_vm0 = vcmask 523264   ;;  %vm789_vm1 = vcmask 261120  }
   0xa   :  { %s2742_s23 = sld [smem:[#allocation8_spill]]  ;;  %s1546_s1 = sshll.u32 %s2735_s16, 4  ;;  %s1547_s1 = int_to_ptr.hbm [resolvable:$true] %s1546_s1 }
   0xf   :  { %v2097_v0 = vld [vmem:[%s2741_s19 + $0x38] sm:$0xff]  ;;  %v2096_v3 = vld [vmem:[%s2741_s19 + $0x30] sm:$0xff]  ;;  %v2095_v7 = vld [vmem:[%s2741_s19 + $0x28] sm:$0xff] }
  0x10   :  { %v2105_v1 = vld [vmem:[%s2741_s19 + $0x78] sm:$0xff]  ;;  %554 = vmatpush.bf16.msra.mxu0 %v2097_v0  ;;  %v2104_v4 = vld [vmem:[%s2741_s19 + $0x70] sm:$0xff]  ;;  %v2103_v8 = vld [vmem:[%s2741_s19 + $0x68] sm:$0xff] }
  0x11   :  { %v2113_v2 = vld [vmem:[%s2741_s19 + $0xb8] sm:$0xff]  ;;  %567 = vmatpush.bf16.msra.mxu1 %v2105_v1  ;;  %v2112_v5 = vld [vmem:[%s2741_s19 + $0xb0] sm:$0xff]  ;;  %v2111_v9 = vld [vmem:[%s2741_s19 + $0xa8] sm:$0xff] }
  0x12   :  { %580 = vmatpush.bf16.msra.mxu2 %v2113_v2  ;;  %v2121_v6 = vld [vmem:[%s2741_s19 + $0xf8] sm:$0xff]  ;;  %v2120_v10 = vld [vmem:[%s2741_s19 + $0xf0] sm:$0xff]  ;;  %v2094_v11 = vld [vmem:[%s2741_s19 + $0x20] sm:$0xff] }
  0x13   :  { %593 = vmatpush.bf16.msra.mxu3 %v2121_v6  ;;  %v2102_v12 = vld [vmem:[%s2741_s19 + $0x60] sm:$0xff]  ;;  %v2119_v14 = vld [vmem:[%s2741_s19 + $0xe8] sm:$0xff]  ;;  %v2093_v15 = vld [vmem:[%s2741_s19 + $0x18] sm:$0xff] }
  0x14   :  { %555 = vmatpush.bf16.msra.mxu0 %v2096_v3  ;;  %v2110_v13 = vld [vmem:[%s2741_s19 + $0xa0] sm:$0xff]  ;;  %v2101_v16 = vld [vmem:[%s2741_s19 + $0x58] sm:$0xff]  ;;  %v2092_v19 = vld [vmem:[%s2741_s19 + $0x10] sm:$0xff] }
  0x15   :  { %568 = vmatpush.bf16.msra.mxu1 %v2104_v4  ;;  %v2109_v17 = vld [vmem:[%s2741_s19 + $0x98] sm:$0xff]  ;;  %v2118_v18 = vld [vmem:[%s2741_s19 + $0xe0] sm:$0xff]  ;;  %v2100_v20 = vld [vmem:[%s2741_s19 + $0x50] sm:$0xff] }
  0x16   :  { %581 = vmatpush.bf16.msra.mxu2 %v2112_v5  ;;  %v2108_v21 = vld [vmem:[%s2741_s19 + $0x90] sm:$0xff]  ;;  %v2117_v22 = vld [vmem:[%s2741_s19 + $0xd8] sm:$0xff]  ;;  %v2091_v23 = vld [vmem:[%s2741_s19 + $0x8] sm:$0xff] }
  0x17   :  { %594 = vmatpush.bf16.msra.mxu3 %v2120_v10  ;;  %v2099_v24 = vld [vmem:[%s2741_s19 + $0x48] sm:$0xff]  ;;  %v73_v25 = vld [vmem:[%s2742_s23] sm:$0xff]  ;;  %v2116_v27 = vld [vmem:[%s2741_s19 + $0xd0] sm:$0xff] }
  0x18   :  { %556 = vmatpush.bf16.msra.mxu0 %v2095_v7  ;;  %v2107_v26 = vld [vmem:[%s2741_s19 + $0x88] sm:$0xff]  ;;  %v197_v29 = vunpack.c.l.b16 %v73_v25  ;;  %v2090_v30 = vld [vmem:[%s2741_s19] sm:$0xff]  ;;  %v198_v33 = vunpack.c.h.b16 %v73_v25  ;;  %v2129_v35 = vld [vmem:[%s2741_s19 + $0x138] sm:$0xff] }
  0x19   :  { %569 = vmatpush.bf16.msra.mxu1 %v2103_v8  ;;  %v74_v28 = vld [vmem:[%s2742_s23 + $0x8] sm:$0xff]  ;;  %v2098_v31 = vld [vmem:[%s2741_s19 + $0x40] sm:$0xff]  ;;  %v2137_v36 = vld [vmem:[%s2741_s19 + $0x178] sm:$0xff] }
  0x1a   :  { %582 = vmatpush.bf16.msra.mxu2 %v2111_v9  ;;  %v199_v32 = vunpack.c.l.b16 %v74_v28  ;;  %v2106_v34 = vld [vmem:[%s2741_s19 + $0x80] sm:$0xff]  ;;  %v2145_v37 = vld [vmem:[%s2741_s19 + $0x1b8] sm:$0xff]  ;;  %v204_v38 = vpack.c.b16 %v197_v29, %v197_v29  ;;  %v2115_v39 = vld [vmem:[%s2741_s19 + $0xc8] sm:$0xff]  ;;  %v205_v41 = vpack.c.b16 %v198_v33, %v198_v33  ;;  %v200_v46 = vunpack.c.h.b16 %v74_v28 }
  0x1b   :  { %595 = vmatpush.bf16.msra.mxu3 %v2119_v14  ;;  %v2128_v42 = vld [vmem:[%s2741_s19 + $0x130] sm:$0xff]  ;;  %v2114_v45 = vld [vmem:[%s2741_s19 + $0xc0] sm:$0xff]  ;;  %v2127_v47 = vld [vmem:[%s2741_s19 + $0x128] sm:$0xff] }
  0x1c   :  { %557 = vmatpush.bf16.msra.mxu0 %v2094_v11  ;;  %v206_v40 = vpack.c.b16 %v199_v32, %v199_v32  ;;  %v2136_v43 = vld [vmem:[%s2741_s19 + $0x170] sm:$0xff]  ;;  %v2135_v48 = vld [vmem:[%s2741_s19 + $0x168] sm:$0xff]  ;;  %v207_v50 = vpack.c.b16 %v200_v46, %v200_v46  ;;  %v2126_v51 = vld [vmem:[%s2741_s19 + $0x120] sm:$0xff] }
  0x1d   :  { %570 = vmatpush.bf16.msra.mxu1 %v2102_v12  ;;  %v2144_v44 = vld [vmem:[%s2741_s19 + $0x1b0] sm:$0xff]  ;;  %v2143_v49 = vld [vmem:[%s2741_s19 + $0x1a8] sm:$0xff]  ;;  %v2134_v52 = vld [vmem:[%s2741_s19 + $0x160] sm:$0xff] }
  0x1e   :  { %583 = vmatpush.bf16.msra.mxu2 %v2110_v13  ;;  %v2142_v53 = vld [vmem:[%s2741_s19 + $0x1a0] sm:$0xff]  ;;  %v2125_v54 = vld [vmem:[%s2741_s19 + $0x118] sm:$0xff]  ;;  %v2124_v57 = vld [vmem:[%s2741_s19 + $0x110] sm:$0xff] }
  0x1f   :  { %596 = vmatpush.bf16.msra.mxu3 %v2118_v18  ;;  %v2133_v55 = vld [vmem:[%s2741_s19 + $0x158] sm:$0xff]  ;;  %v2132_v58 = vld [vmem:[%s2741_s19 + $0x150] sm:$0xff]  ;;  %v2123_v60 = vld [vmem:[%s2741_s19 + $0x108] sm:$0xff] }
  0x20   :  { %558 = vmatpush.bf16.msra.mxu0 %v2093_v15  ;;  %v2141_v56 = vld [vmem:[%s2741_s19 + $0x198] sm:$0xff]  ;;  %v2140_v59 = vld [vmem:[%s2741_s19 + $0x190] sm:$0xff]  ;;  %v2131_v62 = vld [vmem:[%s2741_s19 + $0x148] sm:$0xff] }
  0x21   :  { %571 = vmatpush.bf16.msra.mxu1 %v2101_v16  ;;  %v75_v61 = vld [vmem:[%s2742_s23 + $0x10] sm:$0xff]  ;;  %v2139_v63 = vld [vmem:[%s2741_s19 + $0x188] sm:$0xff]  ;;  %v76_v0 = vld [vmem:[%s2742_s23 + $0x18] sm:$0xf] }
  0x22   :  { %584 = vmatpush.bf16.msra.mxu2 %v2109_v17  ;;  %v201_v1 = vunpack.c.l.b16 %v75_v61  ;;  %v2122_v2 = vld [vmem:[%s2741_s19 + $0x100] sm:$0xff]  ;;  %v202_v3 = vunpack.c.h.b16 %v75_v61  ;;  %v203_v4 = vunpack.c.l.b16 %v76_v0  ;;  %v2153_v10 = vld [vmem:[%s2722_s3 + $0x38] sm:$0xff]  ;;  %v2152_v11 = vld [vmem:[%s2722_s3 + $0x30] sm:$0xff] }
  0x23   :  { %597 = vmatpush.bf16.msra.mxu3 %v2117_v22  ;;  %v2130_v5 = vld [vmem:[%s2741_s19 + $0x140] sm:$0xff]  ;;  %v2151_v12 = vld [vmem:[%s2722_s3 + $0x28] sm:$0xff]  ;;  %v2149_v14 = vld [vmem:[%s2722_s3 + $0x18] sm:$0xff] }
  0x24   :  { %559 = vmatpush.bf16.msra.mxu0 %v2092_v19  ;;  %v2138_v6 = vld [vmem:[%s2741_s19 + $0x180] sm:$0xff]  ;;  %v208_v7 = vpack.c.b16 %v201_v1, %v201_v1  ;;  %v209_v8 = vpack.c.b16 %v202_v3, %v202_v3  ;;  %v210_v9 = vpack.c.b16 %v203_v4, %v203_v4  ;;  %v2148_v15 = vld [vmem:[%s2722_s3 + $0x10] sm:$0xff]  ;;  %v2147_v18 = vld [vmem:[%s2722_s3 + $0x8] sm:$0xff] }
  0x25   :  { %572 = vmatpush.bf16.msra.mxu1 %v2100_v20  ;;  %v2150_v13 = vld [vmem:[%s2722_s3 + $0x20] sm:$0xff]  ;;  %v2155_v29 = vld [vmem:[%s2724_s5 + $0x8] sm:$0xff] }
  0x26   :  { %585 = vmatpush.bf16.msra.mxu2 %v2108_v21  ;;  %v2146_v19 = vld [vmem:[%s2722_s3] sm:$0xff] }
  0x27   :  { %598 = vmatpush.bf16.msra.mxu3 %v2116_v27  ;;  %v834_v46 = vld [vmem:[%s2728_s9] sm:$0xff] }
  0x28   :  { %560 = vmatpush.bf16.msra.mxu0 %v2091_v23  ;;  %v2157_v23 = vld [vmem:[%s2724_s5 + $0x18] sm:$0xff]  ;;  %836 = vrot.lane.b32.xlu0 %v834_v46, %s2320_s0 }
  0x29   :  { %573 = vmatpush.bf16.msra.mxu1 %v2099_v24  ;;  %v2226_v24 = vld [vmem:[%s2721_s2] ss:$0 sm:$0xff] }
  0x2a   :  { %586 = vmatpush.bf16.msra.mxu2 %v2107_v26  ;;  %v2156_v26 = vld [vmem:[%s2724_s5 + $0x10] sm:$0xff] }
  0x2b   :  { %599 = vmatpush.bf16.msra.mxu3 %v2115_v39 }
  0x2c   :  { %561 = vmatpush.bf16.msra.mxu0 %v2090_v30 }
  0x2d   :  { %574 = vmatpush.bf16.msra.mxu1 %v2098_v31 }
  0x2e   :  { %587 = vmatpush.bf16.msra.mxu2 %v2106_v34 }
  0x2f   :  { %562 = vmatmul.bf16.vlgmr.msra.gmra.mxu0 %v204_v38  ;;  %600 = vmatpush.bf16.msra.mxu3 %v2114_v45  ;;  %v2154_v45 = vld [vmem:[%s2724_s5] sm:$0xff] }
  0x30   :  { %606 = vmatpush.bf16.msrb.mxu0 %v2129_v35  ;;  %575 = vmatmul.bf16.vlgmr.msra.gmra.mxu1 %v205_v41 }
  0x31   :  { %619 = vmatpush.bf16.msrb.mxu1 %v2137_v36  ;;  %588 = vmatmul.bf16.vlgmr.msra.gmra.mxu2 %v206_v40 }
  0x32   :  { %632 = vmatpush.bf16.msrb.mxu2 %v2145_v37  ;;  %601 = vmatmul.bf16.vlgmr.msra.gmra.mxu3 %v207_v50 }
  0x33   :  { %715 = vmatpush.bf16.msrb.mxu3 %v2153_v10 }
  0x34   :  { %607 = vmatpush.bf16.msrb.mxu0 %v2128_v42 }
  0x35   :  { %620 = vmatpush.bf16.msrb.mxu1 %v2136_v43 }
  0x36   :  { %633 = vmatpush.bf16.msrb.mxu2 %v2144_v44 }
  0x37   :  { %716 = vmatpush.bf16.msrb.mxu3 %v2152_v11 }
  0x38   :  { %608 = vmatpush.bf16.msrb.mxu0 %v2127_v47  ;;  %v2227_v47 = vld [vmem:[%s2723_s4] ss:$0 sm:$0xff] }
  0x39   :  { %621 = vmatpush.bf16.msrb.mxu1 %v2135_v48 }
  0x3a   :  { %634 = vmatpush.bf16.msrb.mxu2 %v2143_v49 }
  0x3b   :  { %717 = vmatpush.bf16.msrb.mxu3 %v2151_v12 }
  0x3c   :  { %609 = vmatpush.bf16.msrb.mxu0 %v2126_v51 }
  0x3d   :  { %622 = vmatpush.bf16.msrb.mxu1 %v2134_v52 }
  0x3e   :  { %635 = vmatpush.bf16.msrb.mxu2 %v2142_v53  ;;  %v2159_v53 = vld [vmem:[%s2729_s10 + $0x8] sm:$0xff] }
  0x3f   :  { %718 = vmatpush.bf16.msrb.mxu3 %v2150_v13 }
  0x40   :  { %610 = vmatpush.bf16.msrb.mxu0 %v2125_v54  ;;  %v2158_v54 = vld [vmem:[%s2729_s10] sm:$0xff]  ;;  %s2321_s10 = smov 96  }
  0x41   :  { %623 = vmatpush.bf16.msrb.mxu1 %v2133_v55  ;;  %v2228_v55 = vld [vmem:[%s2725_s6] ss:$0 sm:$0xff] }
  0x42   :  { %636 = vmatpush.bf16.msrb.mxu2 %v2141_v56 }
  0x43   :  { %719 = vmatpush.bf16.msrb.mxu3 %v2149_v14 }
  0x44   :  { %611 = vmatpush.bf16.msrb.mxu0 %v2124_v57 }
  0x45   :  { %624 = vmatpush.bf16.msrb.mxu1 %v2132_v58 }
  0x46   :  { %637 = vmatpush.bf16.msrb.mxu2 %v2140_v59 }
  0x47   :  { %720 = vmatpush.bf16.msrb.mxu3 %v2148_v15 }
  0x48   :  { %612 = vmatpush.bf16.msrb.mxu0 %v2123_v60 }
  0x49   :  { %625 = vmatpush.bf16.msrb.mxu1 %v2131_v62 }
  0x4a   :  { %638 = vmatpush.bf16.msrb.mxu2 %v2139_v63 }
  0x4b   :  { %721 = vmatpush.bf16.msrb.mxu3 %v2147_v18 }
  0x4c   :  { %613 = vmatpush.bf16.msrb.mxu0 %v2122_v2 }
  0x4d   :  { %626 = vmatpush.bf16.msrb.mxu1 %v2130_v5 }
  0x4e   :  { %639 = vmatpush.bf16.msrb.mxu2 %v2138_v6 }
  0x4f   :  { %614 = vmatmul.bf16.vlgmr.msrb.gmra.mxu0 %v208_v7  ;;  %722 = vmatpush.bf16.msrb.mxu3 %v2146_v19 }
  0x50   :  { %627 = vmatmul.bf16.vlgmr.msrb.gmra.mxu1 %v209_v8 }
  0x51   :  { %640 = vmatmul.bf16.vlgmr.msrb.gmra.mxu2 %v210_v9  ;;  %875 = vmatpush.bf16.msra.mxu1 %v2159_v53  ;;  %v2037_v53 = vld [vmem:[#allocation2 + $0x158] sm:$0xf] }
  0x52   :  { %774 = vmatpush.bf16.msra.mxu2 %v2157_v23 }
  0x55   :  { %876 = vmatpush.bf16.msra.mxu1 %v2158_v54  ;;  %v2210_v54 = vld [vmem:[#allocation2 + $0x170] sm:$0xf0] }
  0x56   :  { %775 = vmatpush.bf16.msra.mxu2 %v2156_v26 }
  0x5a   :  { %776 = vmatpush.bf16.msra.mxu2 %v2155_v29 }
  0x5e   :  { %777 = vmatpush.bf16.msra.mxu2 %v2154_v45  ;;  %v2217_v45 = vld [vmem:[#allocation2 + $0x1a8] sm:$0xf0] }
  0x9a   :  { %v837_v2 = vpop.permute.xlu0 %836 }
  0xac   :  { %v563_v16 = vpop.f32.mrf.mxu0 }
  0xad   :  { %v576_v17 = vpop.f32.mrf.mxu1  ;;  %v564_v28 = vadd.f32 %v2226_v24, %v563_v16 }
  0xaf   :  { %v577_v30 = vadd.f32 %v576_v17, %v564_v28 }
  0xb4   :  { %v589_v20 = vpop.f32.mrf.mxu2  ;;  %v565_v21 = vpop.f32.mrf.mxu0 }
  0xb5   :  { %v578_v22 = vpop.f32.mrf.mxu1  ;;  %v602_v25 = vpop.f32.mrf.mxu3  ;;  %v590_v32 = vadd.f32 %v589_v20, %v577_v30 }
  0xb7   :  { %v603_v33 = vadd.f32 %v602_v25, %v590_v32  ;;  %v2229_v25 = vld [vmem:[%s2726_s7] ss:$0 sm:$0xff]  ;;  %v2163_v32 = vld [vmem:[%s2731_s12 + $0x18] sm:$0xff] }
  0xb8   :  { %927 = vmatpush.bf16.msrb.mxu2 %v2163_v32  ;;  %v2193_v32 = vld [vmem:[#allocation2 + $0xec] sm:$0xf] }
  0xbc   :  { %v591_v27 = vpop.f32.mrf.mxu2 }
  0xbd   :  { %v604_v31 = vpop.f32.mrf.mxu3  ;;  %v2230_v27 = vld [vmem:[%s2727_s8] ss:$0 sm:$0xff] }
  0xcc   :  { %v615_v34 = vpop.f32.mrf.mxu0 }
  0xcd   :  { %v628_v35 = vpop.f32.mrf.mxu1  ;;  %v616_v36 = vadd.f32 %v615_v34, %v603_v33  ;;  %v2162_v33 = vld [vmem:[%s2731_s12 + $0x10] sm:$0xff]  ;;  %v2161_v34 = vld [vmem:[%s2731_s12 + $0x8] sm:$0xff] }
  0xce   :  { %928 = vmatpush.bf16.msrb.mxu2 %v2162_v33  ;;  %v1983_v33 = vld [vmem:[#allocation2 + $0x104] sm:$0xf0] }
  0xcf   :  { %v629_v37 = vadd.f32 %v628_v35, %v616_v36 }
  0xd2   :  { %929 = vmatpush.bf16.msrb.mxu2 %v2161_v34  ;;  %v1919_v34 = vld [vmem:[#allocation2 + $0x8c] sm:$0xf0] }
  0xd4   :  { %v641_v38 = vpop.f32.mrf.mxu2  ;;  %v617_v40 = vpop.f32.mrf.mxu0 }
  0xd5   :  { %v642_v39 = vadd.f32 %v641_v38, %v629_v37  ;;  %v630_v41 = vpop.f32.mrf.mxu1  ;;  %v2160_v38 = vld [vmem:[%s2731_s12] sm:$0xff] }
  0xd6   :  { %930 = vmatpush.bf16.msrb.mxu2 %v2160_v38  ;;  %v2216_v40 = vld [vmem:[#allocation2 + $0x1a0] sm:$0xf0]  ;;  %v2213_v41 = vld [vmem:[#allocation2 + $0x18c] sm:$0xf] }
  0xd7   :  { %v645_v42 = vmax.f32 %v642_v39, 0.0  ;;  %v2057_v39 = vld [vmem:[#allocation2 + $0x188] sm:$0xf] }
  0xd9   :  { %v646_v43 = vpack.c.bf16 %v645_v42, %v645_v42  ;;  %v2058_v42 = vor.u32 %v2216_v40, %v2057_v39  ;;  %v1889_v39 = vld [vmem:[#allocation2 + $0x38] sm:$0xf]  ;;  %v2174_v40 = vld [vmem:[#allocation2 + $0x50] sm:$0xf0] }
  0xdb   :  { %723 = vmatmul.bf16.vlgmr.msrb.gmra.mxu3 %v646_v43  ;;  %v2059_v43 = vld [vmem:[#allocation2 + $0x1a4] sm:$0xf0] }
  0xdc   :  { %v643_v44 = vpop.f32.mrf.mxu2  ;;  %v2062_v46 = vor.u32 %v2213_v41, %v2059_v43  ;;  %1306 = vmatpush.bf16.msra.mxu3 %v2058_v42  ;;  %v1986_v41 = vor.u32 %v2193_v32, %v1983_v33 }
  0xdd   :  { %v2065_v44 = vld [vmem:[#allocation2 + $0x190] sm:$0xf] }
  0xde   :  { %1319 = vmatpush.bf16.msra.mxu0 %v2062_v46  ;;  %v1955_v46 = vld [vmem:[#allocation2 + $0xcc] sm:$0xf0] }
 0x15e   :  { %v724_v48 = vpop.f32.mrf.mxu3 }
 0x15f   :  { %v725_v49 = vadd.f32 %v2227_v47, %v724_v48  ;;  %v2066_v47 = vor.u32 %v2217_v45, %v2065_v44  ;;  %v2029_v48 = vld [vmem:[#allocation2 + $0x150] sm:$0xf]  ;;  %v2171_v44 = vld [vmem:[#allocation2 + $0x3c] sm:$0xf]  ;;  %v2186_v45 = vld [vmem:[#allocation2 + $0xb4] sm:$0xf] }
 0x161   :  { %v728_v50 = vmax.f32 %v725_v49, 0.0  ;;  %v2209_v49 = vld [vmem:[#allocation2 + $0x168] sm:$0xf0]  ;;  %1332 = vmatpush.bf16.msrb.mxu1 %v2066_v47  ;;  %v1891_v47 = vld [vmem:[#allocation2 + $0x54] sm:$0xf0] }
 0x163   :  { %v729_v51 = vpack.c.bf16 %v728_v50, %v728_v50  ;;  %v2206_v50 = vld [vmem:[#allocation2 + $0x154] sm:$0xf] }
 0x165   :  { %1832 = vmatmul.msk.bf16.vlgmr.msra.gmra.mxu2 %vm766_vm0, %v729_v51  ;;  %v2030_v51 = vor.u32 %v2209_v49, %v2029_v48  ;;  %v1897_v48 = vld [vmem:[#allocation2 + $0x40] sm:$0xf]  ;;  %v2175_v49 = vld [vmem:[#allocation2 + $0x58] sm:$0xf0] }
 0x166   :  { %v726_v52 = vpop.f32.mrf.mxu3 }
 0x167   :  { %v2031_v52 = vld [vmem:[#allocation2 + $0x16c] sm:$0xf0]  ;;  %1307 = vmatpush.bf16.msra.mxu3 %v2030_v51  ;;  %v1861_v51 = vld [vmem:[#allocation2] sm:$0xf] }
 0x1e8   :  { %v779_v56 = vpop.f32.mrf.mxu2 }
 0x1e9   :  { %v780_v57 = vadd.f32 %v2228_v55, %v779_v56  ;;  %v2034_v55 = vor.u32 %v2206_v50, %v2031_v52  ;;  %v2038_v56 = vor.u32 %v2210_v54, %v2037_v53  ;;  %v1890_v50 = vor.u32 %v2174_v40, %v1889_v39  ;;  %v2167_v52 = vld [vmem:[#allocation2 + $0x18] sm:$0xf0]  ;;  %v2164_v53 = vld [vmem:[#allocation2 + $0x4] sm:$0xf]  ;;  %v1989_v39 = vld [vmem:[#allocation2 + $0xf0] sm:$0xf] }
 0x1ea   :  { %v1958_v54 = vor.u32 %v2186_v45, %v1955_v46  ;;  %v1997_v46 = vld [vmem:[#allocation2 + $0xf8] sm:$0xf] }
 0x1eb   :  { %v831_v58 = vmul.f32 0.5, %v780_v57  ;;  %v790_v59 = vsel %vm789_vm1, %v780_v57, 0.0  ;;  %1320 = vmatpush.bf16.msra.mxu0 %v2034_v55  ;;  %1333 = vmatpush.bf16.msrb.mxu1 %v2038_v56  ;;  %v1894_v56 = vor.u32 %v2171_v44, %v1891_v47  ;;  %v2198_v47 = vld [vmem:[#allocation2 + $0x110] sm:$0xf0] }
 0x1ec   :  { %v791_v60 = vrot.slane %v790_v59, 4 }
 0x1ed   :  { %v832_v61 = vmul.f32 1.442695, %v831_v58  ;;  %v2202_v58 = vld [vmem:[#allocation2 + $0x130] sm:$0xf0] }
 0x1ee   :  { %v792_v62 = vadd.f32 %v791_v60, %v790_v59  ;;  %v2199_v59 = vld [vmem:[#allocation2 + $0x11c] sm:$0xf]  ;;  %v2003_v60 = vld [vmem:[#allocation2 + $0x134] sm:$0xf0] }
 0x1ef   :  { %2233 = vpow2.f32 %v832_v61  ;;  %v2009_v61 = vld [vmem:[#allocation2 + $0x120] sm:$0xf] }
 0x1f0   :  { %v781_v63 = vpop.f32.mrf.mxu2  ;;  %v793_v0 = vrot.slane %v792_v62, 2 }
 0x1f2   :  { %v794_v1 = vadd.f32 %v793_v0, %v792_v62  ;;  %v2203_v62 = vld [vmem:[#allocation2 + $0x138] sm:$0xf0]  ;;  %v1973_v0 = vld [vmem:[#allocation2 + $0xe0] sm:$0xf] }
 0x1f4   :  { %v795_v3 = vrot.slane %v794_v1, 1 }
 0x1f5   :  { %v2234_v4 = vpop.eup %2233 }
 0x1f6   :  { %v839_v5 = vmul.f32 %v2234_v4, %v837_v2  ;;  %v796_v6 = vadd.f32 %v795_v3, %v794_v1  ;;  %v2195_v1 = vld [vmem:[#allocation2 + $0xf8] sm:$0xf0]  ;;  %v2006_v2 = vor.u32 %v2199_v59, %v2003_v60  ;;  %v2010_v3 = vor.u32 %v2203_v62, %v2009_v61  ;;  %v2192_v4 = vld [vmem:[#allocation2 + $0xe4] sm:$0xf]  ;;  %v1869_v59 = vld [vmem:[#allocation2 + $0x8] sm:$0xf] }
 0x1f7   :  { %v2168_v60 = vld [vmem:[#allocation2 + $0x20] sm:$0xf0]  ;;  %v2073_v62 = vld [vmem:[#allocation2 + $0x198] sm:$0xf] }
 0x1f8   :  { %841 = vrot.lane.b32.xlu0 %v839_v5, %s2321_s10  ;;  %v797_v7 = vmul.f32 0.125, %v796_v6  ;;  %v2214_v5 = vld [vmem:[#allocation2 + $0x194] sm:$0xf]  ;;  %v2067_v6 = vld [vmem:[#allocation2 + $0x1ac] sm:$0xf0]  ;;  %1321 = vmatpush.bf16.msra.mxu0 %v2006_v2 }
 0x1f9   :  { %1334 = vmatpush.bf16.msrb.mxu1 %v2010_v3  ;;  %v2081_v2 = vld [vmem:[#allocation2 + $0x1a0] sm:$0xf]  ;;  %v2219_v3 = vld [vmem:[#allocation2 + $0x1b8] sm:$0xf0] }
 0x1fa   :  { %v798_v8 = vsub.f32 %v780_v57, %v797_v7  ;;  %v1975_v7 = vld [vmem:[#allocation2 + $0xfc] sm:$0xf0] }
 0x1fc   :  { %v800_v9 = vmul.f32 %v798_v8, %v798_v8 }
 0x1fe   :  { %v801_v10 = vsel %vm789_vm1, %v800_v9, 0.0  ;;  %v2196_v9 = vld [vmem:[#allocation2 + $0x100] sm:$0xf0] }
 0x1ff   :  { %v802_v11 = vrot.slane %v801_v10, 4 }
 0x201   :  { %v803_v12 = vadd.f32 %v802_v11, %v801_v10  ;;  %v2070_v10 = vor.u32 %v2214_v5, %v2067_v6  ;;  %v2207_v11 = vld [vmem:[#allocation2 + $0x15c] sm:$0xf]  ;;  %v1862_v5 = vor.u32 %v2167_v52, %v1861_v51 }
 0x202   :  { %v2179_v6 = vld [vmem:[#allocation2 + $0x7c] sm:$0xf] }
 0x203   :  { %v804_v13 = vrot.slane %v803_v12, 2  ;;  %1345 = vmatpush.bf16.msra.mxu2 %v2070_v10  ;;  %v2187_v51 = vld [vmem:[#allocation2 + $0xbc] sm:$0xf] }
 0x205   :  { %v805_v14 = vadd.f32 %v804_v13, %v803_v12  ;;  %v1974_v12 = vor.u32 %v2195_v1, %v1973_v0  ;;  %v1945_v13 = vld [vmem:[#allocation2 + $0xa8] sm:$0xf]  ;;  %v2215_v0 = vld [vmem:[#allocation2 + $0x19c] sm:$0xf]  ;;  %v2075_v1 = vld [vmem:[#allocation2 + $0x1b4] sm:$0xf0] }
 0x207   :  { %v806_v15 = vrot.slane %v805_v14, 1 }
 0x209   :  { %v807_v16 = vadd.f32 %v806_v15, %v805_v14  ;;  %v2188_v14 = vld [vmem:[#allocation2 + $0xc0] sm:$0xf0]  ;;  %v2039_v15 = vld [vmem:[#allocation2 + $0x174] sm:$0xf0] }
 0x20b   :  { %v808_v17 = vmul.f32 0.125, %v807_v16  ;;  %v1978_v16 = vor.u32 %v2192_v4, %v1975_v7  ;;  %v1927_v7 = vld [vmem:[#allocation2 + $0x94] sm:$0xf0] }
 0x20d   :  { %v809_v18 = vadd.f32 1e-05, %v808_v17  ;;  %1322 = vmatpush.bf16.msra.mxu0 %v1978_v16  ;;  %v2211_v16 = vld [vmem:[#allocation2 + $0x178] sm:$0xf0] }
 0x20f   :  { %2235 = vrsqrt.f32 %v809_v18  ;;  %vm816_vm3 = vweird.f32 %v809_v18 }
 0x215   :  { %v2236_v19 = vpop.eup %2235 }
 0x216   :  { %v811_v20 = vmul.f32 %v2236_v19, %v809_v18  ;;  %vm817_vm2 = vweird.f32 %v2236_v19  ;;  %v2185_v18 = vld [vmem:[#allocation2 + $0xac] sm:$0xf] }
 0x217   :  { %vm818_vm4 = vmor %vm816_vm3, %vm817_vm2 }
 0x218   :  { %v812_v21 = vmul.f32 %v2236_v19, %v811_v20  ;;  %v1953_v20 = vld [vmem:[#allocation2 + $0xb0] sm:$0xf] }
 0x21a   :  { %v813_v22 = vmul.f32 0.5, %v812_v21  ;;  %v2042_v21 = vor.u32 %v2207_v11, %v2039_v15  ;;  %v1930_v15 = vor.u32 %v2179_v6, %v1927_v7  ;;  %v1907_v6 = vld [vmem:[#allocation2 + $0x64] sm:$0xf0]  ;;  %v1913_v7 = vld [vmem:[#allocation2 + $0x50] sm:$0xf] }
 0x21c   :  { %v814_v23 = vsub.f32 1.5, %v813_v22  ;;  %v2189_v22 = vld [vmem:[#allocation2 + $0xc8] sm:$0xf0]  ;;  %1346 = vmatpush.bf16.msra.mxu2 %v2042_v21 }
 0x21e   :  { %v815_v24 = vmul.f32 %v2236_v19, %v814_v23  ;;  %v2200_v23 = vld [vmem:[#allocation2 + $0x124] sm:$0xf] }
 0x220   :  { %v819_v26 = vsel %vm818_vm4, %v2236_v19, %v815_v24  ;;  %v1947_v19 = vld [vmem:[#allocation2 + $0xc4] sm:$0xf0]  ;;  %v2011_v24 = vld [vmem:[#allocation2 + $0x13c] sm:$0xf0] }
 0x221   :  { %v820_v28 = vmul.f32 %v819_v26, %v798_v8  ;;  %v1981_v8 = vld [vmem:[#allocation2 + $0xe8] sm:$0xf]  ;;  %v1917_v26 = vld [vmem:[#allocation2 + $0x70] sm:$0xf] }
 0x222   :  { %v1982_v17 = vor.u32 %v2196_v9, %v1981_v8  ;;  %v1870_v9 = vor.u32 %v2168_v60, %v1869_v59  ;;  %v2183_v59 = vld [vmem:[#allocation2 + $0x98] sm:$0xf0]  ;;  %v2180_v60 = vld [vmem:[#allocation2 + $0x84] sm:$0xf] }
 0x223   :  { %v825_v29 = vmul.f32 %v2229_v25, %v820_v28  ;;  %v1946_v25 = vor.u32 %v2188_v14, %v1945_v13  ;;  %v2014_v28 = vor.u32 %v2200_v23, %v2011_v24  ;;  %v2045_v13 = vld [vmem:[#allocation2 + $0x160] sm:$0xf]  ;;  %v2082_v14 = vor.u32 %v2219_v3, %v2081_v2  ;;  %v1905_v3 = vld [vmem:[#allocation2 + $0x48] sm:$0xf] }
 0x224   :  { %1335 = vmatpush.bf16.msrb.mxu1 %v1982_v17  ;;  %v2208_v17 = vld [vmem:[#allocation2 + $0x164] sm:$0xf] }
 0x225   :  { %v830_v30 = vadd.f32 %v2230_v27, %v825_v29  ;;  %v2181_v27 = vld [vmem:[#allocation2 + $0x88] sm:$0xf0]  ;;  %v1950_v29 = vor.u32 %v2185_v18, %v1947_v19  ;;  %1347 = vmatpush.bf16.msra.mxu2 %v2014_v28  ;;  %v2047_v18 = vld [vmem:[#allocation2 + $0x17c] sm:$0xf0]  ;;  %v2053_v19 = vld [vmem:[#allocation2 + $0x168] sm:$0xf] }
 0x226   :  { %v1918_v38 = vor.u32 %v2181_v27, %v1917_v26  ;;  %v2050_v23 = vor.u32 %v2208_v17, %v2047_v18  ;;  %v1899_v26 = vld [vmem:[#allocation2 + $0x5c] sm:$0xf0]  ;;  %v2017_v27 = vld [vmem:[#allocation2 + $0x128] sm:$0xf]  ;;  %v2170_v17 = vld [vmem:[#allocation2 + $0x30] sm:$0xf0] }
 0x227   :  { %v1537_v31 = vsel %vm789_vm1, %v830_v30, %v780_v57  ;;  %v2001_v57 = vld [vmem:[#allocation2 + $0x118] sm:$0xf]  ;;  %1323 = vmatpush.bf16.msra.mxu0 %v1950_v29  ;;  %v2204_v29 = vld [vmem:[#allocation2 + $0x140] sm:$0xf0] }
 0x228   :  { %1538 = vst.msk [vmem:[%s2736_s17] sm:$0xff] %vm766_vm0, %v1537_v31  ;;  %v2002_v63 = vor.u32 %v2202_v58, %v2001_v57  ;;  %v2178_v31 = vld [vmem:[#allocation2 + $0x74] sm:$0xf]  ;;  %v1898_v57 = vor.u32 %v2175_v49, %v1897_v48  ;;  %v1863_v58 = vld [vmem:[#allocation2 + $0x1c] sm:$0xf0]  ;;  %v2018_v32 = vor.u32 %v2204_v29, %v2017_v27  ;;  %v1998_v48 = vor.u32 %v2198_v47, %v1997_v46 }
 0x229   :  { %v1922_v42 = vor.u32 %v2178_v31, %v1919_v34  ;;  %1348 = vmatpush.bf16.msra.mxu2 %v1986_v41  ;;  %v1866_v8 = vor.u32 %v2164_v53, %v1863_v58  ;;  %v2019_v31 = vld [vmem:[#allocation2 + $0x144] sm:$0xf0]  ;;  %v2025_v34 = vld [vmem:[#allocation2 + $0x130] sm:$0xf]  ;;  %v2197_v41 = vld [vmem:[#allocation2 + $0x108] sm:$0xf0] }
 0x22a   :  { %1308 = vmatpush.bf16.msra.mxu3 %v2002_v63  ;;  %v2218_v63 = vld [vmem:[#allocation2 + $0x1b0] sm:$0xf0]  ;;  %v1990_v44 = vor.u32 %v2197_v41, %v1989_v39  ;;  %v1961_v49 = vld [vmem:[#allocation2 + $0xb8] sm:$0xf]  ;;  %v1933_v58 = vld [vmem:[#allocation2 + $0x80] sm:$0xf] }
 0x22b   :  { %1324 = vmatpush.bf16.msra.mxu0 %v1922_v42  ;;  %v2074_v11 = vor.u32 %v2218_v63, %v2073_v62  ;;  %v2194_v42 = vld [vmem:[#allocation2 + $0xf4] sm:$0xf]  ;;  %v1963_v53 = vld [vmem:[#allocation2 + $0xd4] sm:$0xf0]  ;;  %v1935_v62 = vld [vmem:[#allocation2 + $0x9c] sm:$0xf0] }
 0x22c   :  { %v1941_v63 = vld [vmem:[#allocation2 + $0x88] sm:$0xf]  ;;  %v1002_v27 = vld [vmem:[%s2734_s15] sm:$0xff] }
 0x22d   :  { %1349 = vmatpush.bf16.msra.mxu2 %v1958_v54  ;;  %v1969_v54 = vld [vmem:[#allocation2 + $0xc0] sm:$0xf]  ;;  %v1006_v29 = vperm.slane %v1002_v27, 2 }
 0x22e   :  { %1309 = vmatpush.bf16.msra.mxu3 %v1974_v12  ;;  %v2078_v12 = vor.u32 %v2215_v0, %v2075_v1  ;;  %v2184_v0 = vld [vmem:[#allocation2 + $0xa0] sm:$0xf0]  ;;  %v1938_v1 = vor.u32 %v2180_v60, %v1935_v62 }
 0x22f   :  { %1325 = vmatpush.bf16.msra.mxu0 %v1894_v56  ;;  %v1966_v56 = vor.u32 %v2187_v51, %v1963_v53  ;;  %v1942_v2 = vor.u32 %v2184_v0, %v1941_v63  ;;  %v1008_v0 = vperm.slane %v1002_v27, 4 }
 0x231   :  { %1350 = vmatpush.bf16.msra.mxu2 %v1930_v15  ;;  %v1879_v15 = vld [vmem:[#allocation2 + $0x2c] sm:$0xf0] }
 0x232   :  { %1310 = vmatpush.bf16.msra.mxu3 %v1946_v25  ;;  %v2172_v25 = vld [vmem:[#allocation2 + $0x44] sm:$0xf] }
 0x233   :  { %1326 = vmatpush.bf16.msra.mxu0 %v1866_v8  ;;  %v1902_v28 = vor.u32 %v2172_v25, %v1899_v26  ;;  %v2177_v8 = vld [vmem:[#allocation2 + $0x68] sm:$0xf0] }
 0x235   :  { %1351 = vmatpush.bf16.msra.mxu2 %v1902_v28  ;;  %v1005_v28 = vperm.slane %v1002_v27, 1 }
 0x236   :  { %1311 = vmatpush.bf16.msra.mxu3 %v1918_v38  ;;  %v1871_v38 = vld [vmem:[#allocation2 + $0x24] sm:$0xf0] }
 0x237   :  { %1371 = vmatpush.bf16.msrb.mxu0 %v2078_v12  ;;  %v1877_v12 = vld [vmem:[#allocation2 + $0x10] sm:$0xf] }
 0x23a   :  { %1312 = vmatpush.bf16.msra.mxu3 %v1890_v50  ;;  %v2190_v50 = vld [vmem:[#allocation2 + $0xd0] sm:$0xf0] }
 0x23b   :  { %1372 = vmatpush.bf16.msrb.mxu0 %v2050_v23  ;;  %v1962_v52 = vor.u32 %v2190_v50, %v1961_v49  ;;  %v1009_v50 = vperm.slane %v1002_v27, 5 }
 0x23e   :  { %1313 = vmatpush.bf16.msra.mxu3 %v1862_v5  ;;  %v2173_v5 = vld [vmem:[#allocation2 + $0x4c] sm:$0xf] }
 0x242   :  { %1358 = vmatpush.bf16.msrb.mxu3 %v2074_v11  ;;  %v1914_v11 = vor.u32 %v2177_v8, %v1913_v7 }
 0x26a   :  { %v842_v35 = vpop.permute.xlu0 %841 }
 0x26b   :  { %v844_v36 = vadd.f32 %v842_v35, %v830_v30  ;;  %v1954_v30 = vor.u32 %v2189_v22, %v1953_v20  ;;  %v1925_v35 = vld [vmem:[#allocation2 + $0x78] sm:$0xf]  ;;  %v2212_v20 = vld [vmem:[#allocation2 + $0x180] sm:$0xf0]  ;;  %v2046_v22 = vor.u32 %v2211_v16, %v2045_v13  ;;  %v2169_v13 = vld [vmem:[#allocation2 + $0x28] sm:$0xf0] }
 0x26c   :  { %v2054_v24 = vor.u32 %v2212_v20, %v2053_v19  ;;  %v1885_v16 = vld [vmem:[#allocation2 + $0x18] sm:$0xf]  ;;  %v1878_v18 = vor.u32 %v2169_v13, %v1877_v12 }
 0x26d   :  { %v845_v37 = vpack.c.bf16 %v844_v36, %v844_v36  ;;  %v2182_v36 = vld [vmem:[#allocation2 + $0x90] sm:$0xf0]  ;;  %1336 = vmatpush.bf16.msrb.mxu1 %v1954_v30  ;;  %1359 = vmatpush.bf16.msrb.mxu3 %v2046_v22  ;;  %v2201_v30 = vld [vmem:[#allocation2 + $0x12c] sm:$0xf]  ;;  %v1886_v20 = vor.u32 %v2170_v17, %v1885_v16 }
 0x26e   :  { %v1926_v43 = vor.u32 %v2182_v36, %v1925_v35  ;;  %v2022_v33 = vor.u32 %v2201_v30, %v2019_v31  ;;  %v2205_v35 = vld [vmem:[#allocation2 + $0x148] sm:$0xf0] }
 0x26f   :  { %1841 = vmatmul.msk.bf16.vlgmr.msra.gmra.mxu1 %vm789_vm1, %v845_v37  ;;  %v2231_v37 = vld [vmem:[%s2730_s11] ss:$0 sm:$0xff]  ;;  %v2026_v36 = vor.u32 %v2205_v35, %v2025_v34  ;;  %v1004_v35 = vperm.slane %v1002_v27, 0 }
 0x270   :  { %1373 = vmatpush.bf16.msrb.mxu0 %v2022_v33 }
 0x271   :  { %1337 = vmatpush.bf16.msrb.mxu1 %v1926_v43  ;;  %1360 = vmatpush.bf16.msrb.mxu3 %v2018_v32  ;;  %v1991_v43 = vld [vmem:[#allocation2 + $0x10c] sm:$0xf0] }
 0x272   :  { %v1994_v45 = vor.u32 %v2194_v42, %v1991_v43 }
 0x274   :  { %1374 = vmatpush.bf16.msrb.mxu0 %v1994_v45 }
 0x275   :  { %1338 = vmatpush.bf16.msrb.mxu1 %v1898_v57  ;;  %1361 = vmatpush.bf16.msrb.mxu3 %v1990_v44 }
 0x278   :  { %1375 = vmatpush.bf16.msrb.mxu0 %v1966_v56 }
 0x279   :  { %1339 = vmatpush.bf16.msrb.mxu1 %v1870_v9  ;;  %1362 = vmatpush.bf16.msrb.mxu3 %v1962_v52 }
 0x27c   :  { %1376 = vmatpush.bf16.msrb.mxu0 %v1938_v1 }
 0x27d   :  { %1384 = vmatpush.bf16.msra.mxu1 %v2082_v14  ;;  %v2166_v14 = vld [vmem:[#allocation2 + $0x14] sm:$0xf] }
 0x27e   :  { %v1882_v19 = vor.u32 %v2166_v14, %v1879_v15 }
 0x281   :  { %1385 = vmatpush.bf16.msra.mxu1 %v2054_v24 }
 0x285   :  { %1386 = vmatpush.bf16.msra.mxu1 %v2026_v36 }
 0x289   :  { %1387 = vmatpush.bf16.msra.mxu1 %v1998_v48 }
 0x2ec   :  { %v878_v55 = vpop.f32.mrf.mxu1 }
 0x2ed   :  { %v879_v61 = vadd.f32 %v2231_v37, %v878_v55  ;;  %v2165_v37 = vld [vmem:[#allocation2 + $0xc] sm:$0xf]  ;;  %v2191_v55 = vld [vmem:[#allocation2 + $0xd8] sm:$0xf0] }
 0x2ee   :  { %v1874_v40 = vor.u32 %v2165_v37, %v1871_v38  ;;  %v1970_v57 = vor.u32 %v2191_v55, %v1969_v54  ;;  %v1007_v37 = vperm.slane %v1002_v27, 3  ;;  %v1010_v54 = vperm.slane %v1002_v27, 6 }
 0x2ef   :  { %v882_v4 = vmax.f32 %v879_v61, 0.0  ;;  %v1934_v61 = vor.u32 %v2183_v59, %v1933_v58 }
 0x2f0   :  { %1352 = vmatpush.bf16.msra.mxu2 %v1874_v40  ;;  %1388 = vmatpush.bf16.msra.mxu1 %v1970_v57 }
 0x2f1   :  { %v883_v10 = vpack.c.bf16 %v882_v4, %v882_v4  ;;  %v2176_v4 = vld [vmem:[#allocation2 + $0x60] sm:$0xf0]  ;;  %1363 = vmatpush.bf16.msrb.mxu3 %v1934_v61 }
 0x2f2   :  { %v1906_v9 = vor.u32 %v2176_v4, %v1905_v3 }
 0x2f3   :  { %1858 = vmatmul.msk.bf16.vlgmr.msrb.gmra.mxu2 %vm766_vm0, %v883_v10  ;;  %v1910_v10 = vor.u32 %v2173_v5, %v1907_v6 }
 0x2f4   :  { %v880_v21 = vpop.f32.mrf.mxu1  ;;  %1389 = vmatpush.bf16.msra.mxu1 %v1942_v2 }
 0x2f5   :  { %1364 = vmatpush.bf16.msrb.mxu3 %v1906_v9  ;;  %1377 = vmatpush.bf16.msrb.mxu0 %v1910_v10  ;;  %v2232_v21 = vld [vmem:[%s2732_s13] ss:$0 sm:$0xff]  ;;  %s2322_s13 = smov [#allocation5]  }
 0x2f6   :  { %s1544_s15 = sshll.u32 %s2322_s13, 4  ;;  %s1545_s15 = int_to_ptr.vmem [resolvable:$true] %s1544_s15 }
 0x2f8   :  { %1390 = vmatpush.bf16.msra.mxu1 %v1914_v11 }
 0x2f9   :  { %1365 = vmatpush.bf16.msrb.mxu3 %v1878_v18  ;;  %1378 = vmatpush.bf16.msrb.mxu0 %v1882_v19 }
 0x2fc   :  { %1391 = vmatpush.bf16.msra.mxu1 %v1886_v20 }
 0x376   :  { %v932_v22 = vpop.f32.mrf.mxu2 }
 0x377   :  { %v933_v23 = vadd.f32 %v2232_v21, %v932_v22 }
 0x379   :  { %v936_v24 = vmax.f32 %v933_v23, 0.0 }
 0x37b   :  { %v937_v25 = vpack.c.bf16 %v936_v24, %v936_v24 }
 0x37d   :  { %1314 = vmatmul.bf16.vlgmr.msra.gmra.mxu3 %v937_v25  ;;  %1327 = vmatmul.bf16.vlgmr.msra.gmra.mxu0 %v937_v25 }
 0x37e   :  { %1340 = vmatmul.bf16.vlgmr.msrb.gmra.mxu1 %v937_v25  ;;  %1353 = vmatmul.bf16.vlgmr.msra.gmra.mxu2 %v937_v25  ;;  %v934_v26 = vpop.f32.mrf.mxu2 }
 0x38d   :  { %1366 = vmatmul.bf16.vlgmr.msrb.gmra.mxu3 %v937_v25  ;;  %1379 = vmatmul.bf16.vlgmr.msrb.gmra.mxu0 %v937_v25 }
 0x38e   :  { %1392 = vmatmul.bf16.vlgmr.msra.gmra.mxu1 %v937_v25 }
 0x3fa   :  { %v1328_v30 = vpop.f32.mrf.mxu0 }
 0x3fb   :  { %v1329_v31 = vadd.f32 %v1328_v30, %v1005_v28  ;;  %v1341_v32 = vpop.f32.mrf.mxu1 }
 0x3fc   :  { %v1342_v33 = vadd.f32 %v1341_v32, %v1006_v29 }
 0x3fd   :  { %v2084_v34 = vmul.f32 -1.442695, %v1329_v31 }
 0x3fe   :  { %v2085_v36 = vmul.f32 -1.442695, %v1342_v33 }
 0x3ff   :  { %2237 = vpow2.f32 %v2084_v34 }
 0x400   :  { %2239 = vpow2.f32 %v2085_v36  ;;  %v1315_v38 = vpop.f32.mrf.mxu3 }
 0x401   :  { %v1316_v39 = vadd.f32 %v1315_v38, %v1004_v35  ;;  %v1354_v40 = vpop.f32.mrf.mxu2 }
 0x402   :  { %v1355_v41 = vadd.f32 %v1354_v40, %v1007_v37  ;;  %v1330_v42 = vpop.f32.mrf.mxu0 }
 0x403   :  { %v2083_v43 = vmul.f32 -1.442695, %v1316_v39  ;;  %v1343_v44 = vpop.f32.mrf.mxu1 }
 0x404   :  { %v2086_v45 = vmul.f32 -1.442695, %v1355_v41 }
 0x405   :  { %v2238_v46 = vpop.eup %2237  ;;  %2241 = vpow2.f32 %v2083_v43 }
 0x406   :  { %v2240_v47 = vpop.eup %2239  ;;  %v1419_v48 = vadd.f32 1.0, %v2238_v46  ;;  %2243 = vpow2.f32 %v2086_v45 }
 0x407   :  { %v1420_v49 = vadd.f32 1.0, %v2240_v47 }
 0x408   :  { %2245 = vrcp.f32 %v1419_v48  ;;  %v1317_v51 = vpop.f32.mrf.mxu3  ;;  %v1449_v3 = vand.u32 2147483647, %v1419_v48  ;;  %vm1445_vm5 = vweird.f32 %v1419_v48  ;;  %v1451_v7 = vand.u32 2147483648, %v1419_v48 }
 0x409   :  { %2247 = vrcp.f32 %v1420_v49  ;;  %v1356_v52 = vpop.f32.mrf.mxu2  ;;  %v1464_v8 = vand.u32 2147483647, %v1420_v49  ;;  %v1466_v10 = vand.u32 2147483648, %v1420_v49  ;;  %vm1460_vm8 = vweird.f32 %v1420_v49 }
 0x40a   :  { %v1380_v53 = vpop.f32.mrf.mxu0  ;;  %vm2693_vm7 = vcmp.eq.f32.partialorder %v1449_v3, 8.507059e+37  ;;  %v1452_v22 = vor.u32 1.1754944e-38, %v1451_v7 }
 0x40b   :  { %v2242_v55 = vpop.eup %2241  ;;  %v1381_v56 = vadd.f32 %v1380_v53, %v1009_v50  ;;  %v1393_v57 = vpop.f32.mrf.mxu1  ;;  %vm2697_vm10 = vcmp.eq.f32.partialorder %v1464_v8, 8.507059e+37  ;;  %v1467_v26 = vor.u32 1.1754944e-38, %v1466_v10 }
 0x40c   :  { %v2244_v58 = vpop.eup %2243  ;;  %v2687_v59 = vadd.f32 1.0, %v2242_v55  ;;  %v1394_v63 = vadd.f32 %v1393_v57, %v1010_v54 }
 0x40d   :  { %v2689_v60 = vadd.f32 1.0, %v2244_v58  ;;  %v2088_v61 = vmul.f32 -1.442695, %v1381_v56 }
 0x40e   :  { %v2246_v62 = vpop.eup %2245  ;;  %2249 = vrcp.f32 %v2687_v59  ;;  %v2089_v11 = vmul.f32 -1.442695, %v1394_v63  ;;  %v1434_v31 = vand.u32 2147483647, %v2687_v59  ;;  %v1436_v32 = vand.u32 2147483648, %v2687_v59 }
 0x40f   :  { %v2248_v1 = vpop.eup %2247  ;;  %v1441_v2 = vmul.f32 %v2246_v62, %v1419_v48  ;;  %2251 = vrcp.f32 %v2689_v60  ;;  %vm1446_vm6 = vweird.f32 %v2246_v62  ;;  %v1481_v40 = vand.u32 2147483648, %v2689_v60 }
 0x410   :  { %v1456_v4 = vmul.f32 %v2248_v1, %v1420_v49  ;;  %v1367_v5 = vpop.f32.mrf.mxu3  ;;  %2253 = vpow2.f32 %v2088_v61  ;;  %vm1461_vm9 = vweird.f32 %v2248_v1  ;;  %vm1447_vm11 = vmor %vm1445_vm5, %vm1446_vm6  ;;  %v1479_v43 = vand.u32 2147483647, %v2689_v60 }
 0x411   :  { %v1442_v6 = vsub.f32 1.0, %v1441_v2  ;;  %v1368_v12 = vadd.f32 %v1367_v5, %v1008_v0  ;;  %2255 = vpow2.f32 %v2089_v11  ;;  %vm1462_vm12 = vmor %vm1460_vm8, %vm1461_vm9  ;;  %vm1430_vm15 = vweird.f32 %v2687_v59 }
 0x412   :  { %v1457_v9 = vsub.f32 1.0, %v1456_v4  ;;  %v1382_v13 = vpop.f32.mrf.mxu0  ;;  %v1437_v47 = vor.u32 1.1754944e-38, %v1436_v32  ;;  %vm1475_vm1 = vweird.f32 %v2689_v60  ;;  %vm1435_vm2 = vcmp.eq.f32.partialorder %v1434_v31, 8.507059e+37 }
 0x413   :  { %v1443_v14 = vmul.f32 %v2246_v62, %v1442_v6  ;;  %v1395_v16 = vpop.f32.mrf.mxu1  ;;  %v2087_v19 = vmul.f32 -1.442695, %v1368_v12  ;;  %v1482_v50 = vor.u32 1.1754944e-38, %v1481_v40  ;;  %vm1480_vm4 = vcmp.eq.f32.partialorder %v1479_v43, 8.507059e+37 }
 0x414   :  { %v2250_v17 = vpop.eup %2249  ;;  %v1458_v18 = vmul.f32 %v2248_v1, %v1457_v9 }
 0x415   :  { %v2252_v20 = vpop.eup %2251  ;;  %v1444_v21 = vadd.f32 %v2246_v62, %v1443_v14  ;;  %v1426_v24 = vmul.f32 %v2250_v17, %v2687_v59  ;;  %2257 = vpow2.f32 %v2087_v19  ;;  %vm1431_vm13 = vweird.f32 %v2250_v17 }
 0x416   :  { %v1459_v25 = vadd.f32 %v2248_v1, %v1458_v18  ;;  %v1471_v27 = vmul.f32 %v2252_v20, %v2689_v60  ;;  %v2254_v28 = vpop.eup %2253  ;;  %vm1476_vm14 = vweird.f32 %v2252_v20  ;;  %vm1432_vm0 = vmor %vm1430_vm15, %vm1431_vm13 }
 0x417   :  { %v1448_v29 = vsel %vm1447_vm11, %v2246_v62, %v1444_v21  ;;  %v1427_v30 = vsub.f32 1.0, %v1426_v24  ;;  %v1423_v36 = vadd.f32 1.0, %v2254_v28  ;;  %v2256_v41 = vpop.eup %2255  ;;  %vm1477_vm3 = vmor %vm1475_vm1, %vm1476_vm14 }
 0x418   :  { %v1453_v33 = vsel %vm2693_vm7, %v1452_v22, %v1448_v29  ;;  %v1463_v34 = vsel %vm1462_vm12, %v2248_v1, %v1459_v25  ;;  %v1472_v35 = vsub.f32 1.0, %v1471_v27  ;;  %v1369_v37 = vpop.f32.mrf.mxu3  ;;  %v1424_v45 = vadd.f32 1.0, %v2256_v41 }
 0x419   :  { %1531 = vst [vmem:[#allocation5 + $0x8] sm:$0xff] %v1453_v33  ;;  %v1468_v38 = vsel %vm2697_vm10, %v1467_v26, %v1463_v34  ;;  %v1428_v39 = vmul.f32 %v2250_v17, %v1427_v30  ;;  %2259 = vrcp.f32 %v1423_v36  ;;  %v1511_v59 = vand.u32 2147483648, %v1423_v36 }
 0x41a   :  { %1532 = vst [vmem:[#allocation5 + $0x10] sm:$0xff] %v1468_v38  ;;  %v1473_v42 = vmul.f32 %v2252_v20, %v1472_v35  ;;  %2261 = vrcp.f32 %v1424_v45  ;;  %v1509_v62 = vand.u32 2147483647, %v1423_v36  ;;  %vm1505_vm6 = vweird.f32 %v1423_v36 }
 0x41b   :  { %v1429_v44 = vadd.f32 %v2250_v17, %v1428_v39  ;;  %v2258_v46 = vpop.eup %2257  ;;  %v1524_v2 = vand.u32 2147483647, %v1424_v45  ;;  %v1526_v3 = vand.u32 2147483648, %v1424_v45  ;;  %v1512_v4 = vor.u32 1.1754944e-38, %v1511_v59 }
 0x41c   :  { %v1474_v48 = vadd.f32 %v2252_v20, %v1473_v42  ;;  %v1422_v54 = vadd.f32 1.0, %v2258_v46  ;;  %vm1510_vm9 = vcmp.eq.f32.partialorder %v1509_v62, 8.507059e+37  ;;  %vm1520_vm10 = vweird.f32 %v1424_v45 }
 0x41d   :  { %v1433_v49 = vsel %vm1432_vm0, %v2250_v17, %v1429_v44  ;;  %vm1525_vm12 = vcmp.eq.f32.partialorder %v1524_v2, 8.507059e+37  ;;  %v1527_v11 = vor.u32 1.1754944e-38, %v1526_v3 }
 0x41e   :  { %v1438_v51 = vsel %vm1435_vm2, %v1437_v47, %v1433_v49  ;;  %v1478_v52 = vsel %vm1477_vm3, %v2252_v20, %v1474_v48  ;;  %2263 = vrcp.f32 %v1422_v54  ;;  %v1496_v12 = vand.u32 2147483648, %v1422_v54 }
 0x41f   :  { %1530 = vst [vmem:[#allocation5] sm:$0xff] %v1438_v51  ;;  %v1483_v53 = vsel %vm1480_vm4, %v1482_v50, %v1478_v52  ;;  %v2260_v55 = vpop.eup %2259  ;;  %v1494_v15 = vand.u32 2147483647, %v1422_v54  ;;  %vm1490_vm14 = vweird.f32 %v1422_v54 }
 0x420   :  { %1533 = vst [vmem:[#allocation5 + $0x18] sm:$0xff] %v1483_v53  ;;  %v1501_v56 = vmul.f32 %v2260_v55, %v1423_v36  ;;  %v2262_v57 = vpop.eup %2261  ;;  %vm1506_vm5 = vweird.f32 %v2260_v55  ;;  %v1497_v18 = vor.u32 1.1754944e-38, %v1496_v12 }
 0x421   :  { %v1516_v61 = vmul.f32 %v2262_v57, %v1424_v45  ;;  %vm1507_vm7 = vmor %vm1505_vm6, %vm1506_vm5  ;;  %vm1521_vm8 = vweird.f32 %v2262_v57  ;;  %vm1495_vm0 = vcmp.eq.f32.partialorder %v1494_v15, 8.507059e+37 }
 0x422   :  { %v1502_v58 = vsub.f32 1.0, %v1501_v56  ;;  %vm1522_vm11 = vmor %vm1520_vm10, %vm1521_vm8 }
 0x423   :  { %v1517_v63 = vsub.f32 1.0, %v1516_v61 }
 0x424   :  { %v1503_v60 = vmul.f32 %v2260_v55, %v1502_v58  ;;  %v2264_v0 = vpop.eup %2263 }
 0x425   :  { %v1518_v5 = vmul.f32 %v2262_v57, %v1517_v63  ;;  %v1486_v6 = vmul.f32 %v2264_v0, %v1422_v54  ;;  %vm1491_vm13 = vweird.f32 %v2264_v0 }
 0x426   :  { %v1504_v1 = vadd.f32 %v2260_v55, %v1503_v60  ;;  %vm1492_vm15 = vmor %vm1490_vm14, %vm1491_vm13 }
 0x427   :  { %v1519_v9 = vadd.f32 %v2262_v57, %v1518_v5  ;;  %v1487_v10 = vsub.f32 1.0, %v1486_v6 }
 0x428   :  { %v1508_v7 = vsel %vm1507_vm7, %v2260_v55, %v1504_v1 }
 0x429   :  { %v1513_v8 = vsel %vm1510_vm9, %v1512_v4, %v1508_v7  ;;  %v1523_v13 = vsel %vm1522_vm11, %v2262_v57, %v1519_v9  ;;  %v1488_v14 = vmul.f32 %v2264_v0, %v1487_v10 }
 0x42a   :  { %1535 = vst [vmem:[#allocation5 + $0x28] sm:$0xff] %v1513_v8  ;;  %v1528_v16 = vsel %vm1525_vm12, %v1527_v11, %v1523_v13 }
 0x42b   :  { %1536 = vst [vmem:[#allocation5 + $0x30] sm:$0xff] %v1528_v16  ;;  %v1489_v17 = vadd.f32 %v2264_v0, %v1488_v14 }
 0x42d   :  { %v1493_v19 = vsel %vm1492_vm15, %v2264_v0, %v1489_v17 }
 0x42e   :  { %v1498_v20 = vsel %vm1495_vm0, %v1497_v18, %v1493_v19 }
 0x42f   :  { %1534 = vst [vmem:[#allocation5 + $0x20] sm:$0xff] %v1498_v20 }
 0x430   :  { %1549 = dma.vmem_to_hbm [thread:$0]  %s1545_s15, 896, %s1547_s1, [#allocation4]  }
 0x431   :  { %2315 = dma.done.wait [#allocation4], 896  }
 0x432   :  { %2316 = vsyncadd [#allocation4], 4294966400 }
 0x433   :  { %1558 = vsyncpa [#allocation3], 1 }
 0x434   :  { %1559 = vsyncpa [#allocation4], 1 }

</bundles_post_ra>
